<compile_context>
chip_gen: v6e
topology: v6e:2x2x1
jax: 0.10.0
libtpu: 0.0.40
codegen_flags: <defaults>
</compile_context>

<pallas_src>
import math
import functools

import jax
import jax.numpy as jnp
import numpy as np
from jax.experimental import pallas as pl
from jax.experimental.pallas import tpu as pltpu


def _make_fused_lstm_kernel(num_layers):
    """Build a kernel computing a `num_layers`-deep unidirectional LSTM.

    Kernel signature:
        kernel(x_ref, [wih_t_ref, whh_t_ref, bias_ref] * num_layers, out_ref)

      x_ref   : (B, S, E)   batch_first input (resident in VMEM)
      wih_t   : (in_l, 4H)  input->hidden weight of layer l, transposed
      whh_t   : (H, 4H)     hidden->hidden weight of layer l, transposed
      bias    : (1, 4H)     b_ih + b_hh of layer l
      out_ref : (S, B, H)   time-major hidden states of the last layer
    """

    def kernel(*refs):
        x_ref = refs[0]
        layer_refs = refs[1:1 + 3 * num_layers]
        out_ref = refs[1 + 3 * num_layers]

        B, S, E = x_ref.shape
        H = layer_refs[1].shape[0]                       # whh0_t: (H, 4H)
        f32 = jnp.float32

        # Hoist every weight / bias read out of the time loop.
        weights = []
        for l in range(num_layers):
            wih_t = layer_refs[3 * l + 0][...]           # (in_l, 4H)
            whh_t = layer_refs[3 * l + 1][...]           # (H, 4H)
            bias = layer_refs[3 * l + 2][...]            # (1, 4H)
            weights.append((wih_t, whh_t, bias))

        # Layer-0 input projection for ALL timesteps in one MXU matmul.
        # (B,S,E) -> (B*S,E) is a tile-aligned (layout-free) reshape.
        x_flat = x_ref[...].astype(f32).reshape(B * S, E)
        gi0 = jnp.dot(x_flat, weights[0][0], preferred_element_type=f32)
        gi0 = (gi0 + weights[0][2]).reshape(B, S, 4 * H)  # (B, S, 4H)

        def cell(gates, c_prev):
            # nn.LSTM gate order: (i, f, g, o); keep 4H fused on the lane axis.
            i = jax.nn.sigmoid(gates[:, 0 * H:1 * H])
            f = jax.nn.sigmoid(gates[:, 1 * H:2 * H])
            g = jnp.tanh(gates[:, 2 * H:3 * H])
            o = jax.nn.sigmoid(gates[:, 3 * H:4 * H])
            c = f * c_prev + i * g
            h = o * jnp.tanh(c)
            return h, c

        h = [jnp.zeros((B, H), f32) for _ in range(num_layers)]
        c = [jnp.zeros((B, H), f32) for _ in range(num_layers)]

        # Fully unrolled time loop (S is small & static).  h[l] at t+1 depends
        # only on h[l] at t (not on deeper layers), so unrolling lets the LLO
        # scheduler wavefront-overlap the per-layer recurrence chains.
        for t in range(S):
            g0 = gi0[:, t, :] + jnp.dot(h[0], weights[0][1],
                                        preferred_element_type=f32)
            h[0], c[0] = cell(g0, c[0])
            for l in range(1, num_layers):
                # TODO(synk): inter-layer dropout omitted (eval-mode nn.LSTM).
                wih_t, whh_t, bias = weights[l]
                gl = (jnp.dot(h[l - 1], wih_t, preferred_element_type=f32)
                      + jnp.dot(h[l], whh_t, preferred_element_type=f32)
                      + bias)
                h[l], c[l] = cell(gl, c[l])
            out_ref[t] = h[num_layers - 1].astype(out_ref.dtype)

    return kernel


@functools.partial(jax.jit, static_argnums=(0,))
def _fused_lstm_forward(num_layers, x_bse, *flat_layer_params):
    """x_bse: (B, S, E) batch_first.  Returns (B, S, H) batch_first."""
    B, S, E = x_bse.shape
    H = flat_layer_params[1].shape[0]                    # whh0_t: (H, 4H)
    n_in = 1 + 3 * num_layers

    out_tm = pl.pallas_call(
        _make_fused_lstm_kernel(num_layers),
        out_shape=jax.ShapeDtypeStruct((S, B, H), jnp.float32),
        in_specs=[pl.BlockSpec(memory_space=pltpu.MemorySpace.VMEM)] * n_in,
        out_specs=pl.BlockSpec(memory_space=pltpu.MemorySpace.VMEM),
    )(x_bse.astype(jnp.float32), *flat_layer_params)

    # One tiny relayout back to batch_first (the old per-layer input/output
    # transposes and the second pallas_call are gone).
    return jnp.transpose(out_tm, (1, 0, 2))


class SingleLstmPallas:
    """Pallas port of SingleLstm (bidirectional=False, eval-mode forward)."""

    def __init__(self, hidden_size=32, layers=2, dropout_chance=0.5,
                 bidirectional=False, embedding_size=64, key=None):
        assert key is not None
        assert not bidirectional, "SingleLstm is used with bidirectional=False"
        self.hidden_size = hidden_size
        self.layers = layers
        self.dropout_chance = dropout_chance      # unused: eval-mode forward
        self.embedding_size = embedding_size

        # PyTorch nn.LSTM init: U(-1/sqrt(H), 1/sqrt(H)) for every parameter.
        bound = 1.0 / math.sqrt(hidden_size)
        self.params = []                  # PyTorch orientation (for reference)
        self._flat_kernel_params = []     # transposed / combined for the kernel
        for layer in range(layers):
            in_sz = embedding_size if layer == 0 else hidden_size
            key, k1, k2, k3, k4 = jax.random.split(key, 5)
            w_ih = jax.random.uniform(k1, (4 * hidden_size, in_sz),
                                      jnp.float32, -bound, bound)
            w_hh = jax.random.uniform(k2, (4 * hidden_size, hidden_size),
                                      jnp.float32, -bound, bound)
            b_ih = jax.random.uniform(k3, (4 * hidden_size,),
                                      jnp.float32, -bound, bound)
            b_hh = jax.random.uniform(k4, (4 * hidden_size,),
                                      jnp.float32, -bound, bound)
            self.params.append((w_ih, w_hh, b_ih, b_hh))
            self._flat_kernel_params.extend([
                jnp.asarray(w_ih.T, jnp.float32),                      # (in,4H)
                jnp.asarray(w_hh.T, jnp.float32),                      # (H, 4H)
                jnp.asarray((b_ih + b_hh).reshape(1, 4 * hidden_size),
                            jnp.float32),                              # (1, 4H)
            ])

    def __call__(self, x_bse):
        # x_bse: (B, S, E) batch_first, like the PyTorch module.
        return _fused_lstm_forward(self.layers, x_bse,
                                   *self._flat_kernel_params)


# ---------------- pure-JAX reference (for correctness check) ----------------
def _lstm_layer_ref(x_tbe, w_ih, w_hh, b_ih, b_hh):
    H = w_hh.shape[1]
    B = x_tbe.shape[1]

    def step(carry, x_t):
        h, c = carry
        gates = x_t @ w_ih.T + h @ w_hh.T + b_ih + b_hh
        i = jax.nn.sigmoid(gates[:, 0 * H:1 * H])
        f = jax.nn.sigmoid(gates[:, 1 * H:2 * H])
        g = jnp.tanh(gates[:, 2 * H:3 * H])
        o = jax.nn.sigmoid(gates[:, 3 * H:4 * H])
        c = f * c + i * g
        h = o * jnp.tanh(c)
        return (h, c), h

    h0 = jnp.zeros((B, H), jnp.float32)
    c0 = jnp.zeros((B, H), jnp.float32)
    _, ys = jax.lax.scan(step, (h0, c0), x_tbe)
    return ys


def _forward_ref(model, x_bse):
    x = jnp.transpose(x_bse, (1, 0, 2))
    for (w_ih, w_hh, b_ih, b_hh) in model.params:
        x = _lstm_layer_ref(x, w_ih, w_hh, b_ih, b_hh)
    return jnp.transpose(x, (1, 0, 2))


if __name__ == "__main__":
    key = jax.random.PRNGKey(0)
    k_params, k_x = jax.random.split(key)

    B, S, E, H = 2, 8, 64, 32       # batch, seq, embedding_size, hidden_size
    model = SingleLstmPallas(hidden_size=H, layers=2, embedding_size=E,
                             key=k_params)

    x = jax.random.normal(k_x, (B, S, E), jnp.float32)

    out = jax.block_until_ready(model(x))
    assert out.shape == (B, S, H), out.shape

    ref = jax.block_until_ready(_forward_ref(model, x))
    np.testing.assert_allclose(np.asarray(out), np.asarray(ref),
                               rtol=1e-3, atol=1e-3)

    print("KERNEL_OK")
</pallas_src>

<mosaic_0001>
module attributes {stable_mosaic.version = 11 : i64} {
  func.func @kernel(%arg0: memref<2x8x64xf32, #tpu.memory_space<vmem>>, %arg1: memref<64x128xf32, #tpu.memory_space<vmem>>, %arg2: memref<32x128xf32, #tpu.memory_space<vmem>>, %arg3: memref<1x128xf32, #tpu.memory_space<vmem>>, %arg4: memref<32x128xf32, #tpu.memory_space<vmem>>, %arg5: memref<32x128xf32, #tpu.memory_space<vmem>>, %arg6: memref<1x128xf32, #tpu.memory_space<vmem>>, %arg7: memref<8x2x32xf32, #tpu.memory_space<vmem>>) attributes {dimension_semantics = [], scalar_prefetch = 0 : i64, scratch_operands = 0 : i64, tpu.core_type = #tpu.core_type<tc>} {
    %c0 = arith.constant 0 : index
    %c0_0 = arith.constant 0 : index
    %0 = vector.load %arg1[%c0, %c0_0] : memref<64x128xf32, #tpu.memory_space<vmem>>, vector<64x128xf32>
    %c0_1 = arith.constant 0 : index
    %c0_2 = arith.constant 0 : index
    %1 = vector.load %arg2[%c0_1, %c0_2] : memref<32x128xf32, #tpu.memory_space<vmem>>, vector<32x128xf32>
    %c0_3 = arith.constant 0 : index
    %c0_4 = arith.constant 0 : index
    %2 = vector.load %arg3[%c0_3, %c0_4] : memref<1x128xf32, #tpu.memory_space<vmem>>, vector<1x128xf32>
    %c0_5 = arith.constant 0 : index
    %c0_6 = arith.constant 0 : index
    %3 = vector.load %arg4[%c0_5, %c0_6] : memref<32x128xf32, #tpu.memory_space<vmem>>, vector<32x128xf32>
    %c0_7 = arith.constant 0 : index
    %c0_8 = arith.constant 0 : index
    %4 = vector.load %arg5[%c0_7, %c0_8] : memref<32x128xf32, #tpu.memory_space<vmem>>, vector<32x128xf32>
    %c0_9 = arith.constant 0 : index
    %c0_10 = arith.constant 0 : index
    %5 = vector.load %arg6[%c0_9, %c0_10] : memref<1x128xf32, #tpu.memory_space<vmem>>, vector<1x128xf32>
    %c0_11 = arith.constant 0 : index
    %c0_12 = arith.constant 0 : index
    %c0_13 = arith.constant 0 : index
    %6 = vector.load %arg0[%c0_11, %c0_12, %c0_13] : memref<2x8x64xf32, #tpu.memory_space<vmem>>, vector<2x8x64xf32>
    %7 = vector.shape_cast %6 : vector<2x8x64xf32> to vector<16x64xf32>
    %cst = arith.constant dense<0.000000e+00> : vector<16x128xf32>
    %8 = tpu.matmul %7, %0, %cst {dimension_numbers = #tpu.dot_dimension_numbers<[1], [0], [0], [1], [0, 0, 1, 1], [], []>} : vector<16x64xf32>, vector<64x128xf32>, vector<16x128xf32> -> vector<16x128xf32>
    %9 = vector.broadcast %2 : vector<1x128xf32> to vector<16x128xf32>
    %10 = arith.addf %8, %9 : vector<16x128xf32>
    %11 = vector.shape_cast %10 : vector<16x128xf32> to vector<2x8x128xf32>
    %cst_14 = arith.constant 0.000000e+00 : f32
    %12 = vector.broadcast %cst_14 : f32 to vector<2x32xf32>
    %cst_15 = arith.constant 0.000000e+00 : f32
    %13 = vector.broadcast %cst_15 : f32 to vector<2x32xf32>
    %cst_16 = arith.constant 0.000000e+00 : f32
    %14 = vector.broadcast %cst_16 : f32 to vector<2x32xf32>
    %cst_17 = arith.constant 0.000000e+00 : f32
    %15 = vector.broadcast %cst_17 : f32 to vector<2x32xf32>
    %16 = vector.extract_strided_slice %11 {offsets = [0, 0, 0], sizes = [2, 1, 128], strides = [1, 1, 1]} : vector<2x8x128xf32> to vector<2x1x128xf32>
    %17 = vector.shape_cast %16 : vector<2x1x128xf32> to vector<2x128xf32>
    %cst_18 = arith.constant dense<0.000000e+00> : vector<2x128xf32>
    %18 = tpu.matmul %12, %1, %cst_18 {dimension_numbers = #tpu.dot_dimension_numbers<[1], [0], [0], [1], [0, 0, 1, 1], [], []>} : vector<2x32xf32>, vector<32x128xf32>, vector<2x128xf32> -> vector<2x128xf32>
    %19 = arith.addf %17, %18 : vector<2x128xf32>
    %20 = vector.extract_strided_slice %19 {offsets = [0, 0], sizes = [2, 32], strides = [1, 1]} : vector<2x128xf32> to vector<2x32xf32>
    %21 = arith.negf %20 : vector<2x32xf32>
    %22 = math.exp %21 : vector<2x32xf32>
    %cst_19 = arith.constant 1.000000e+00 : f32
    %23 = vector.broadcast %cst_19 : f32 to vector<2x32xf32>
    %24 = arith.addf %23, %22 : vector<2x32xf32>
    %25 = arith.divf %23, %24 : vector<2x32xf32>
    %26 = vector.extract_strided_slice %19 {offsets = [0, 32], sizes = [2, 32], strides = [1, 1]} : vector<2x128xf32> to vector<2x32xf32>
    %27 = arith.negf %26 : vector<2x32xf32>
    %28 = math.exp %27 : vector<2x32xf32>
    %cst_20 = arith.constant 1.000000e+00 : f32
    %29 = vector.broadcast %cst_20 : f32 to vector<2x32xf32>
    %30 = arith.addf %29, %28 : vector<2x32xf32>
    %31 = arith.divf %29, %30 : vector<2x32xf32>
    %32 = vector.extract_strided_slice %19 {offsets = [0, 64], sizes = [2, 32], strides = [1, 1]} : vector<2x128xf32> to vector<2x32xf32>
    %33 = math.tanh %32 : vector<2x32xf32>
    %34 = vector.extract_strided_slice %19 {offsets = [0, 96], sizes = [2, 32], strides = [1, 1]} : vector<2x128xf32> to vector<2x32xf32>
    %35 = arith.negf %34 : vector<2x32xf32>
    %36 = math.exp %35 : vector<2x32xf32>
    %cst_21 = arith.constant 1.000000e+00 : f32
    %37 = vector.broadcast %cst_21 : f32 to vector<2x32xf32>
    %38 = arith.addf %37, %36 : vector<2x32xf32>
    %39 = arith.divf %37, %38 : vector<2x32xf32>
    %40 = arith.mulf %31, %14 : vector<2x32xf32>
    %41 = arith.mulf %25, %33 : vector<2x32xf32>
    %42 = arith.addf %40, %41 : vector<2x32xf32>
    %43 = math.tanh %42 : vector<2x32xf32>
    %44 = arith.mulf %39, %43 : vector<2x32xf32>
    %cst_22 = arith.constant dense<0.000000e+00> : vector<2x128xf32>
    %45 = tpu.matmul %44, %3, %cst_22 {dimension_numbers = #tpu.dot_dimension_numbers<[1], [0], [0], [1], [0, 0, 1, 1], [], []>} : vector<2x32xf32>, vector<32x128xf32>, vector<2x128xf32> -> vector<2x128xf32>
    %cst_23 = arith.constant dense<0.000000e+00> : vector<2x128xf32>
    %46 = tpu.matmul %13, %4, %cst_23 {dimension_numbers = #tpu.dot_dimension_numbers<[1], [0], [0], [1], [0, 0, 1, 1], [], []>} : vector<2x32xf32>, vector<32x128xf32>, vector<2x128xf32> -> vector<2x128xf32>
    %47 = arith.addf %45, %46 : vector<2x128xf32>
    %48 = vector.broadcast %5 : vector<1x128xf32> to vector<2x128xf32>
    %49 = arith.addf %47, %48 : vector<2x128xf32>
    %50 = vector.extract_strided_slice %49 {offsets = [0, 0], sizes = [2, 32], strides = [1, 1]} : vector<2x128xf32> to vector<2x32xf32>
    %51 = arith.negf %50 : vector<2x32xf32>
    %52 = math.exp %51 : vector<2x32xf32>
    %cst_24 = arith.constant 1.000000e+00 : f32
    %53 = vector.broadcast %cst_24 : f32 to vector<2x32xf32>
    %54 = arith.addf %53, %52 : vector<2x32xf32>
    %55 = arith.divf %53, %54 : vector<2x32xf32>
    %56 = vector.extract_strided_slice %49 {offsets = [0, 32], sizes = [2, 32], strides = [1, 1]} : vector<2x128xf32> to vector<2x32xf32>
    %57 = arith.negf %56 : vector<2x32xf32>
    %58 = math.exp %57 : vector<2x32xf32>
    %cst_25 = arith.constant 1.000000e+00 : f32
    %59 = vector.broadcast %cst_25 : f32 to vector<2x32xf32>
    %60 = arith.addf %59, %58 : vector<2x32xf32>
    %61 = arith.divf %59, %60 : vector<2x32xf32>
    %62 = vector.extract_strided_slice %49 {offsets = [0, 64], sizes = [2, 32], strides = [1, 1]} : vector<2x128xf32> to vector<2x32xf32>
    %63 = math.tanh %62 : vector<2x32xf32>
    %64 = vector.extract_strided_slice %49 {offsets = [0, 96], sizes = [2, 32], strides = [1, 1]} : vector<2x128xf32> to vector<2x32xf32>
    %65 = arith.negf %64 : vector<2x32xf32>
    %66 = math.exp %65 : vector<2x32xf32>
    %cst_26 = arith.constant 1.000000e+00 : f32
    %67 = vector.broadcast %cst_26 : f32 to vector<2x32xf32>
    %68 = arith.addf %67, %66 : vector<2x32xf32>
    %69 = arith.divf %67, %68 : vector<2x32xf32>
    %70 = arith.mulf %61, %15 : vector<2x32xf32>
    %71 = arith.mulf %55, %63 : vector<2x32xf32>
    %72 = arith.addf %70, %71 : vector<2x32xf32>
    %73 = math.tanh %72 : vector<2x32xf32>
    %74 = arith.mulf %69, %73 : vector<2x32xf32>
    %c0_27 = arith.constant 0 : index
    %c0_28 = arith.constant 0 : index
    %c0_29 = arith.constant 0 : index
    %75 = vector.load %arg7[%c0_27, %c0_28, %c0_29] : memref<8x2x32xf32, #tpu.memory_space<vmem>>, vector<1x2x32xf32>
    %76 = vector.shape_cast %75 : vector<1x2x32xf32> to vector<2x32xf32>
    %77 = vector.shape_cast %74 : vector<2x32xf32> to vector<1x2x32xf32>
    tpu.vector_store %arg7[%c0_27, %c0_28, %c0_29], %77 {strides = array<i32>} : memref<8x2x32xf32, #tpu.memory_space<vmem>>, vector<1x2x32xf32>,
    %78 = vector.extract_strided_slice %11 {offsets = [0, 1, 0], sizes = [2, 1, 128], strides = [1, 1, 1]} : vector<2x8x128xf32> to vector<2x1x128xf32>
    %79 = vector.shape_cast %78 : vector<2x1x128xf32> to vector<2x128xf32>
    %cst_30 = arith.constant dense<0.000000e+00> : vector<2x128xf32>
    %80 = tpu.matmul %44, %1, %cst_30 {dimension_numbers = #tpu.dot_dimension_numbers<[1], [0], [0], [1], [0, 0, 1, 1], [], []>} : vector<2x32xf32>, vector<32x128xf32>, vector<2x128xf32> -> vector<2x128xf32>
    %81 = arith.addf %79, %80 : vector<2x128xf32>
    %82 = vector.extract_strided_slice %81 {offsets = [0, 0], sizes = [2, 32], strides = [1, 1]} : vector<2x128xf32> to vector<2x32xf32>
    %83 = arith.negf %82 : vector<2x32xf32>
    %84 = math.exp %83 : vector<2x32xf32>
    %cst_31 = arith.constant 1.000000e+00 : f32
    %85 = vector.broadcast %cst_31 : f32 to vector<2x32xf32>
    %86 = arith.addf %85, %84 : vector<2x32xf32>
    %87 = arith.divf %85, %86 : vector<2x32xf32>
    %88 = vector.extract_strided_slice %81 {offsets = [0, 32], sizes = [2, 32], strides = [1, 1]} : vector<2x128xf32> to vector<2x32xf32>
    %89 = arith.negf %88 : vector<2x32xf32>
    %90 = math.exp %89 : vector<2x32xf32>
    %cst_32 = arith.constant 1.000000e+00 : f32
    %91 = vector.broadcast %cst_32 : f32 to vector<2x32xf32>
    %92 = arith.addf %91, %90 : vector<2x32xf32>
    %93 = arith.divf %91, %92 : vector<2x32xf32>
    %94 = vector.extract_strided_slice %81 {offsets = [0, 64], sizes = [2, 32], strides = [1, 1]} : vector<2x128xf32> to vector<2x32xf32>
    %95 = math.tanh %94 : vector<2x32xf32>
    %96 = vector.extract_strided_slice %81 {offsets = [0, 96], sizes = [2, 32], strides = [1, 1]} : vector<2x128xf32> to vector<2x32xf32>
    %97 = arith.negf %96 : vector<2x32xf32>
    %98 = math.exp %97 : vector<2x32xf32>
    %cst_33 = arith.constant 1.000000e+00 : f32
    %99 = vector.broadcast %cst_33 : f32 to vector<2x32xf32>
    %100 = arith.addf %99, %98 : vector<2x32xf32>
    %101 = arith.divf %99, %100 : vector<2x32xf32>
    %102 = arith.mulf %93, %42 : vector<2x32xf32>
    %103 = arith.mulf %87, %95 : vector<2x32xf32>
    %104 = arith.addf %102, %103 : vector<2x32xf32>
    %105 = math.tanh %104 : vector<2x32xf32>
    %106 = arith.mulf %101, %105 : vector<2x32xf32>
    %cst_34 = arith.constant dense<0.000000e+00> : vector<2x128xf32>
    %107 = tpu.matmul %106, %3, %cst_34 {dimension_numbers = #tpu.dot_dimension_numbers<[1], [0], [0], [1], [0, 0, 1, 1], [], []>} : vector<2x32xf32>, vector<32x128xf32>, vector<2x128xf32> -> vector<2x128xf32>
    %cst_35 = arith.constant dense<0.000000e+00> : vector<2x128xf32>
    %108 = tpu.matmul %74, %4, %cst_35 {dimension_numbers = #tpu.dot_dimension_numbers<[1], [0], [0], [1], [0, 0, 1, 1], [], []>} : vector<2x32xf32>, vector<32x128xf32>, vector<2x128xf32> -> vector<2x128xf32>
    %109 = arith.addf %107, %108 : vector<2x128xf32>
    %110 = vector.broadcast %5 : vector<1x128xf32> to vector<2x128xf32>
    %111 = arith.addf %109, %110 : vector<2x128xf32>
    %112 = vector.extract_strided_slice %111 {offsets = [0, 0], sizes = [2, 32], strides = [1, 1]} : vector<2x128xf32> to vector<2x32xf32>
    %113 = arith.negf %112 : vector<2x32xf32>
    %114 = math.exp %113 : vector<2x32xf32>
    %cst_36 = arith.constant 1.000000e+00 : f32
    %115 = vector.broadcast %cst_36 : f32 to vector<2x32xf32>
    %116 = arith.addf %115, %114 : vector<2x32xf32>
    %117 = arith.divf %115, %116 : vector<2x32xf32>
    %118 = vector.extract_strided_slice %111 {offsets = [0, 32], sizes = [2, 32], strides = [1, 1]} : vector<2x128xf32> to vector<2x32xf32>
    %119 = arith.negf %118 : vector<2x32xf32>
    %120 = math.exp %119 : vector<2x32xf32>
    %cst_37 = arith.constant 1.000000e+00 : f32
    %121 = vector.broadcast %cst_37 : f32 to vector<2x32xf32>
    %122 = arith.addf %121, %120 : vector<2x32xf32>
    %123 = arith.divf %121, %122 : vector<2x32xf32>
    %124 = vector.extract_strided_slice %111 {offsets = [0, 64], sizes = [2, 32], strides = [1, 1]} : vector<2x128xf32> to vector<2x32xf32>
    %125 = math.tanh %124 : vector<2x32xf32>
    %126 = vector.extract_strided_slice %111 {offsets = [0, 96], sizes = [2, 32], strides = [1, 1]} : vector<2x128xf32> to vector<2x32xf32>
    %127 = arith.negf %126 : vector<2x32xf32>
    %128 = math.exp %127 : vector<2x32xf32>
    %cst_38 = arith.constant 1.000000e+00 : f32
    %129 = vector.broadcast %cst_38 : f32 to vector<2x32xf32>
    %130 = arith.addf %129, %128 : vector<2x32xf32>
    %131 = arith.divf %129, %130 : vector<2x32xf32>
    %132 = arith.mulf %123, %72 : vector<2x32xf32>
    %133 = arith.mulf %117, %125 : vector<2x32xf32>
    %134 = arith.addf %132, %133 : vector<2x32xf32>
    %135 = math.tanh %134 : vector<2x32xf32>
    %136 = arith.mulf %131, %135 : vector<2x32xf32>
    %c1 = arith.constant 1 : index
    %c0_39 = arith.constant 0 : index
    %c0_40 = arith.constant 0 : index
    %137 = vector.load %arg7[%c1, %c0_39, %c0_40] : memref<8x2x32xf32, #tpu.memory_space<vmem>>, vector<1x2x32xf32>
    %138 = vector.shape_cast %137 : vector<1x2x32xf32> to vector<2x32xf32>
    %139 = vector.shape_cast %136 : vector<2x32xf32> to vector<1x2x32xf32>
    tpu.vector_store %arg7[%c1, %c0_39, %c0_40], %139 {strides = array<i32>} : memref<8x2x32xf32, #tpu.memory_space<vmem>>, vector<1x2x32xf32>,
    %140 = vector.extract_strided_slice %11 {offsets = [0, 2, 0], sizes = [2, 1, 128], strides = [1, 1, 1]} : vector<2x8x128xf32> to vector<2x1x128xf32>
    %141 = vector.shape_cast %140 : vector<2x1x128xf32> to vector<2x128xf32>
    %cst_41 = arith.constant dense<0.000000e+00> : vector<2x128xf32>
    %142 = tpu.matmul %106, %1, %cst_41 {dimension_numbers = #tpu.dot_dimension_numbers<[1], [0], [0], [1], [0, 0, 1, 1], [], []>} : vector<2x32xf32>, vector<32x128xf32>, vector<2x128xf32> -> vector<2x128xf32>
    %143 = arith.addf %141, %142 : vector<2x128xf32>
    %144 = vector.extract_strided_slice %143 {offsets = [0, 0], sizes = [2, 32], strides = [1, 1]} : vector<2x128xf32> to vector<2x32xf32>
    %145 = arith.negf %144 : vector<2x32xf32>
    %146 = math.exp %145 : vector<2x32xf32>
    %cst_42 = arith.constant 1.000000e+00 : f32
    %147 = vector.broadcast %cst_42 : f32 to vector<2x32xf32>
    %148 = arith.addf %147, %146 : vector<2x32xf32>
    %149 = arith.divf %147, %148 : vector<2x32xf32>
    %150 = vector.extract_strided_slice %143 {offsets = [0, 32], sizes = [2, 32], strides = [1, 1]} : vector<2x128xf32> to vector<2x32xf32>
    %151 = arith.negf %150 : vector<2x32xf32>
    %152 = math.exp %151 : vector<2x32xf32>
    %cst_43 = arith.constant 1.000000e+00 : f32
    %153 = vector.broadcast %cst_43 : f32 to vector<2x32xf32>
    %154 = arith.addf %153, %152 : vector<2x32xf32>
    %155 = arith.divf %153, %154 : vector<2x32xf32>
    %156 = vector.extract_strided_slice %143 {offsets = [0, 64], sizes = [2, 32], strides = [1, 1]} : vector<2x128xf32> to vector<2x32xf32>
    %157 = math.tanh %156 : vector<2x32xf32>
    %158 = vector.extract_strided_slice %143 {offsets = [0, 96], sizes = [2, 32], strides = [1, 1]} : vector<2x128xf32> to vector<2x32xf32>
    %159 = arith.negf %158 : vector<2x32xf32>
    %160 = math.exp %159 : vector<2x32xf32>
    %cst_44 = arith.constant 1.000000e+00 : f32
    %161 = vector.broadcast %cst_44 : f32 to vector<2x32xf32>
    %162 = arith.addf %161, %160 : vector<2x32xf32>
    %163 = arith.divf %161, %162 : vector<2x32xf32>
    %164 = arith.mulf %155, %104 : vector<2x32xf32>
    %165 = arith.mulf %149, %157 : vector<2x32xf32>
    %166 = arith.addf %164, %165 : vector<2x32xf32>
    %167 = math.tanh %166 : vector<2x32xf32>
    %168 = arith.mulf %163, %167 : vector<2x32xf32>
    %cst_45 = arith.constant dense<0.000000e+00> : vector<2x128xf32>
    %169 = tpu.matmul %168, %3, %cst_45 {dimension_numbers = #tpu.dot_dimension_numbers<[1], [0], [0], [1], [0, 0, 1, 1], [], []>} : vector<2x32xf32>, vector<32x128xf32>, vector<2x128xf32> -> vector<2x128xf32>
    %cst_46 = arith.constant dense<0.000000e+00> : vector<2x128xf32>
    %170 = tpu.matmul %136, %4, %cst_46 {dimension_numbers = #tpu.dot_dimension_numbers<[1], [0], [0], [1], [0, 0, 1, 1], [], []>} : vector<2x32xf32>, vector<32x128xf32>, vector<2x128xf32> -> vector<2x128xf32>
    %171 = arith.addf %169, %170 : vector<2x128xf32>
    %172 = vector.broadcast %5 : vector<1x128xf32> to vector<2x128xf32>
    %173 = arith.addf %171, %172 : vector<2x128xf32>
    %174 = vector.extract_strided_slice %173 {offsets = [0, 0], sizes = [2, 32], strides = [1, 1]} : vector<2x128xf32> to vector<2x32xf32>
    %175 = arith.negf %174 : vector<2x32xf32>
    %176 = math.exp %175 : vector<2x32xf32>
    %cst_47 = arith.constant 1.000000e+00 : f32
    %177 = vector.broadcast %cst_47 : f32 to vector<2x32xf32>
    %178 = arith.addf %177, %176 : vector<2x32xf32>
    %179 = arith.divf %177, %178 : vector<2x32xf32>
    %180 = vector.extract_strided_slice %173 {offsets = [0, 32], sizes = [2, 32], strides = [1, 1]} : vector<2x128xf32> to vector<2x32xf32>
    %181 = arith.negf %180 : vector<2x32xf32>
    %182 = math.exp %181 : vector<2x32xf32>
    %cst_48 = arith.constant 1.000000e+00 : f32
    %183 = vector.broadcast %cst_48 : f32 to vector<2x32xf32>
    %184 = arith.addf %183, %182 : vector<2x32xf32>
    %185 = arith.divf %183, %184 : vector<2x32xf32>
    %186 = vector.extract_strided_slice %173 {offsets = [0, 64], sizes = [2, 32], strides = [1, 1]} : vector<2x128xf32> to vector<2x32xf32>
    %187 = math.tanh %186 : vector<2x32xf32>
    %188 = vector.extract_strided_slice %173 {offsets = [0, 96], sizes = [2, 32], strides = [1, 1]} : vector<2x128xf32> to vector<2x32xf32>
    %189 = arith.negf %188 : vector<2x32xf32>
    %190 = math.exp %189 : vector<2x32xf32>
    %cst_49 = arith.constant 1.000000e+00 : f32
    %191 = vector.broadcast %cst_49 : f32 to vector<2x32xf32>
    %192 = arith.addf %191, %190 : vector<2x32xf32>
    %193 = arith.divf %191, %192 : vector<2x32xf32>
    %194 = arith.mulf %185, %134 : vector<2x32xf32>
    %195 = arith.mulf %179, %187 : vector<2x32xf32>
    %196 = arith.addf %194, %195 : vector<2x32xf32>
    %197 = math.tanh %196 : vector<2x32xf32>
    %198 = arith.mulf %193, %197 : vector<2x32xf32>
    %c2 = arith.constant 2 : index
    %c0_50 = arith.constant 0 : index
    %c0_51 = arith.constant 0 : index
    %199 = vector.load %arg7[%c2, %c0_50, %c0_51] : memref<8x2x32xf32, #tpu.memory_space<vmem>>, vector<1x2x32xf32>
    %200 = vector.shape_cast %199 : vector<1x2x32xf32> to vector<2x32xf32>
    %201 = vector.shape_cast %198 : vector<2x32xf32> to vector<1x2x32xf32>
    tpu.vector_store %arg7[%c2, %c0_50, %c0_51], %201 {strides = array<i32>} : memref<8x2x32xf32, #tpu.memory_space<vmem>>, vector<1x2x32xf32>,
    %202 = vector.extract_strided_slice %11 {offsets = [0, 3, 0], sizes = [2, 1, 128], strides = [1, 1, 1]} : vector<2x8x128xf32> to vector<2x1x128xf32>
    %203 = vector.shape_cast %202 : vector<2x1x128xf32> to vector<2x128xf32>
    %cst_52 = arith.constant dense<0.000000e+00> : vector<2x128xf32>
    %204 = tpu.matmul %168, %1, %cst_52 {dimension_numbers = #tpu.dot_dimension_numbers<[1], [0], [0], [1], [0, 0, 1, 1], [], []>} : vector<2x32xf32>, vector<32x128xf32>, vector<2x128xf32> -> vector<2x128xf32>
    %205 = arith.addf %203, %204 : vector<2x128xf32>
    %206 = vector.extract_strided_slice %205 {offsets = [0, 0], sizes = [2, 32], strides = [1, 1]} : vector<2x128xf32> to vector<2x32xf32>
    %207 = arith.negf %206 : vector<2x32xf32>
    %208 = math.exp %207 : vector<2x32xf32>
    %cst_53 = arith.constant 1.000000e+00 : f32
    %209 = vector.broadcast %cst_53 : f32 to vector<2x32xf32>
    %210 = arith.addf %209, %208 : vector<2x32xf32>
    %211 = arith.divf %209, %210 : vector<2x32xf32>
    %212 = vector.extract_strided_slice %205 {offsets = [0, 32], sizes = [2, 32], strides = [1, 1]} : vector<2x128xf32> to vector<2x32xf32>
    %213 = arith.negf %212 : vector<2x32xf32>
    %214 = math.exp %213 : vector<2x32xf32>
    %cst_54 = arith.constant 1.000000e+00 : f32
    %215 = vector.broadcast %cst_54 : f32 to vector<2x32xf32>
    %216 = arith.addf %215, %214 : vector<2x32xf32>
    %217 = arith.divf %215, %216 : vector<2x32xf32>
    %218 = vector.extract_strided_slice %205 {offsets = [0, 64], sizes = [2, 32], strides = [1, 1]} : vector<2x128xf32> to vector<2x32xf32>
    %219 = math.tanh %218 : vector<2x32xf32>
    %220 = vector.extract_strided_slice %205 {offsets = [0, 96], sizes = [2, 32], strides = [1, 1]} : vector<2x128xf32> to vector<2x32xf32>
    %221 = arith.negf %220 : vector<2x32xf32>
    %222 = math.exp %221 : vector<2x32xf32>
    %cst_55 = arith.constant 1.000000e+00 : f32
    %223 = vector.broadcast %cst_55 : f32 to vector<2x32xf32>
    %224 = arith.addf %223, %222 : vector<2x32xf32>
    %225 = arith.divf %223, %224 : vector<2x32xf32>
    %226 = arith.mulf %217, %166 : vector<2x32xf32>
    %227 = arith.mulf %211, %219 : vector<2x32xf32>
    %228 = arith.addf %226, %227 : vector<2x32xf32>
    %229 = math.tanh %228 : vector<2x32xf32>
    %230 = arith.mulf %225, %229 : vector<2x32xf32>
    %cst_56 = arith.constant dense<0.000000e+00> : vector<2x128xf32>
    %231 = tpu.matmul %230, %3, %cst_56 {dimension_numbers = #tpu.dot_dimension_numbers<[1], [0], [0], [1], [0, 0, 1, 1], [], []>} : vector<2x32xf32>, vector<32x128xf32>, vector<2x128xf32> -> vector<2x128xf32>
    %cst_57 = arith.constant dense<0.000000e+00> : vector<2x128xf32>
    %232 = tpu.matmul %198, %4, %cst_57 {dimension_numbers = #tpu.dot_dimension_numbers<[1], [0], [0], [1], [0, 0, 1, 1], [], []>} : vector<2x32xf32>, vector<32x128xf32>, vector<2x128xf32> -> vector<2x128xf32>
    %233 = arith.addf %231, %232 : vector<2x128xf32>
    %234 = vector.broadcast %5 : vector<1x128xf32> to vector<2x128xf32>
    %235 = arith.addf %233, %234 : vector<2x128xf32>
    %236 = vector.extract_strided_slice %235 {offsets = [0, 0], sizes = [2, 32], strides = [1, 1]} : vector<2x128xf32> to vector<2x32xf32>
    %237 = arith.negf %236 : vector<2x32xf32>
    %238 = math.exp %237 : vector<2x32xf32>
    %cst_58 = arith.constant 1.000000e+00 : f32
    %239 = vector.broadcast %cst_58 : f32 to vector<2x32xf32>
    %240 = arith.addf %239, %238 : vector<2x32xf32>
    %241 = arith.divf %239, %240 : vector<2x32xf32>
    %242 = vector.extract_strided_slice %235 {offsets = [0, 32], sizes = [2, 32], strides = [1, 1]} : vector<2x128xf32> to vector<2x32xf32>
    %243 = arith.negf %242 : vector<2x32xf32>
    %244 = math.exp %243 : vector<2x32xf32>
    %cst_59 = arith.constant 1.000000e+00 : f32
    %245 = vector.broadcast %cst_59 : f32 to vector<2x32xf32>
    %246 = arith.addf %245, %244 : vector<2x32xf32>
    %247 = arith.divf %245, %246 : vector<2x32xf32>
    %248 = vector.extract_strided_slice %235 {offsets = [0, 64], sizes = [2, 32], strides = [1, 1]} : vector<2x128xf32> to vector<2x32xf32>
    %249 = math.tanh %248 : vector<2x32xf32>
    %250 = vector.extract_strided_slice %235 {offsets = [0, 96], sizes = [2, 32], strides = [1, 1]} : vector<2x128xf32> to vector<2x32xf32>
    %251 = arith.negf %250 : vector<2x32xf32>
    %252 = math.exp %251 : vector<2x32xf32>
    %cst_60 = arith.constant 1.000000e+00 : f32
    %253 = vector.broadcast %cst_60 : f32 to vector<2x32xf32>
    %254 = arith.addf %253, %252 : vector<2x32xf32>
    %255 = arith.divf %253, %254 : vector<2x32xf32>
    %256 = arith.mulf %247, %196 : vector<2x32xf32>
    %257 = arith.mulf %241, %249 : vector<2x32xf32>
    %258 = arith.addf %256, %257 : vector<2x32xf32>
    %259 = math.tanh %258 : vector<2x32xf32>
    %260 = arith.mulf %255, %259 : vector<2x32xf32>
    %c3 = arith.constant 3 : index
    %c0_61 = arith.constant 0 : index
    %c0_62 = arith.constant 0 : index
    %261 = vector.load %arg7[%c3, %c0_61, %c0_62] : memref<8x2x32xf32, #tpu.memory_space<vmem>>, vector<1x2x32xf32>
    %262 = vector.shape_cast %261 : vector<1x2x32xf32> to vector<2x32xf32>
    %263 = vector.shape_cast %260 : vector<2x32xf32> to vector<1x2x32xf32>
    tpu.vector_store %arg7[%c3, %c0_61, %c0_62], %263 {strides = array<i32>} : memref<8x2x32xf32, #tpu.memory_space<vmem>>, vector<1x2x32xf32>,
    %264 = vector.extract_strided_slice %11 {offsets = [0, 4, 0], sizes = [2, 1, 128], strides = [1, 1, 1]} : vector<2x8x128xf32> to vector<2x1x128xf32>
    %265 = vector.shape_cast %264 : vector<2x1x128xf32> to vector<2x128xf32>
    %cst_63 = arith.constant dense<0.000000e+00> : vector<2x128xf32>
    %266 = tpu.matmul %230, %1, %cst_63 {dimension_numbers = #tpu.dot_dimension_numbers<[1], [0], [0], [1], [0, 0, 1, 1], [], []>} : vector<2x32xf32>, vector<32x128xf32>, vector<2x128xf32> -> vector<2x128xf32>
    %267 = arith.addf %265, %266 : vector<2x128xf32>
    %268 = vector.extract_strided_slice %267 {offsets = [0, 0], sizes = [2, 32], strides = [1, 1]} : vector<2x128xf32> to vector<2x32xf32>
    %269 = arith.negf %268 : vector<2x32xf32>
    %270 = math.exp %269 : vector<2x32xf32>
    %cst_64 = arith.constant 1.000000e+00 : f32
    %271 = vector.broadcast %cst_64 : f32 to vector<2x32xf32>
    %272 = arith.addf %271, %270 : vector<2x32xf32>
    %273 = arith.divf %271, %272 : vector<2x32xf32>
    %274 = vector.extract_strided_slice %267 {offsets = [0, 32], sizes = [2, 32], strides = [1, 1]} : vector<2x128xf32> to vector<2x32xf32>
    %275 = arith.negf %274 : vector<2x32xf32>
    %276 = math.exp %275 : vector<2x32xf32>
    %cst_65 = arith.constant 1.000000e+00 : f32
    %277 = vector.broadcast %cst_65 : f32 to vector<2x32xf32>
    %278 = arith.addf %277, %276 : vector<2x32xf32>
    %279 = arith.divf %277, %278 : vector<2x32xf32>
    %280 = vector.extract_strided_slice %267 {offsets = [0, 64], sizes = [2, 32], strides = [1, 1]} : vector<2x128xf32> to vector<2x32xf32>
    %281 = math.tanh %280 : vector<2x32xf32>
    %282 = vector.extract_strided_slice %267 {offsets = [0, 96], sizes = [2, 32], strides = [1, 1]} : vector<2x128xf32> to vector<2x32xf32>
    %283 = arith.negf %282 : vector<2x32xf32>
    %284 = math.exp %283 : vector<2x32xf32>
    %cst_66 = arith.constant 1.000000e+00 : f32
    %285 = vector.broadcast %cst_66 : f32 to vector<2x32xf32>
    %286 = arith.addf %285, %284 : vector<2x32xf32>
    %287 = arith.divf %285, %286 : vector<2x32xf32>
    %288 = arith.mulf %279, %228 : vector<2x32xf32>
    %289 = arith.mulf %273, %281 : vector<2x32xf32>
    %290 = arith.addf %288, %289 : vector<2x32xf32>
    %291 = math.tanh %290 : vector<2x32xf32>
    %292 = arith.mulf %287, %291 : vector<2x32xf32>
    %cst_67 = arith.constant dense<0.000000e+00> : vector<2x128xf32>
    %293 = tpu.matmul %292, %3, %cst_67 {dimension_numbers = #tpu.dot_dimension_numbers<[1], [0], [0], [1], [0, 0, 1, 1], [], []>} : vector<2x32xf32>, vector<32x128xf32>, vector<2x128xf32> -> vector<2x128xf32>
    %cst_68 = arith.constant dense<0.000000e+00> : vector<2x128xf32>
    %294 = tpu.matmul %260, %4, %cst_68 {dimension_numbers = #tpu.dot_dimension_numbers<[1], [0], [0], [1], [0, 0, 1, 1], [], []>} : vector<2x32xf32>, vector<32x128xf32>, vector<2x128xf32> -> vector<2x128xf32>
    %295 = arith.addf %293, %294 : vector<2x128xf32>
    %296 = vector.broadcast %5 : vector<1x128xf32> to vector<2x128xf32>
    %297 = arith.addf %295, %296 : vector<2x128xf32>
    %298 = vector.extract_strided_slice %297 {offsets = [0, 0], sizes = [2, 32], strides = [1, 1]} : vector<2x128xf32> to vector<2x32xf32>
    %299 = arith.negf %298 : vector<2x32xf32>
    %300 = math.exp %299 : vector<2x32xf32>
    %cst_69 = arith.constant 1.000000e+00 : f32
    %301 = vector.broadcast %cst_69 : f32 to vector<2x32xf32>
    %302 = arith.addf %301, %300 : vector<2x32xf32>
    %303 = arith.divf %301, %302 : vector<2x32xf32>
    %304 = vector.extract_strided_slice %297 {offsets = [0, 32], sizes = [2, 32], strides = [1, 1]} : vector<2x128xf32> to vector<2x32xf32>
    %305 = arith.negf %304 : vector<2x32xf32>
    %306 = math.exp %305 : vector<2x32xf32>
    %cst_70 = arith.constant 1.000000e+00 : f32
    %307 = vector.broadcast %cst_70 : f32 to vector<2x32xf32>
    %308 = arith.addf %307, %306 : vector<2x32xf32>
    %309 = arith.divf %307, %308 : vector<2x32xf32>
    %310 = vector.extract_strided_slice %297 {offsets = [0, 64], sizes = [2, 32], strides = [1, 1]} : vector<2x128xf32> to vector<2x32xf32>
    %311 = math.tanh %310 : vector<2x32xf32>
    %312 = vector.extract_strided_slice %297 {offsets = [0, 96], sizes = [2, 32], strides = [1, 1]} : vector<2x128xf32> to vector<2x32xf32>
    %313 = arith.negf %312 : vector<2x32xf32>
    %314 = math.exp %313 : vector<2x32xf32>
    %cst_71 = arith.constant 1.000000e+00 : f32
    %315 = vector.broadcast %cst_71 : f32 to vector<2x32xf32>
    %316 = arith.addf %315, %314 : vector<2x32xf32>
    %317 = arith.divf %315, %316 : vector<2x32xf32>
    %318 = arith.mulf %309, %258 : vector<2x32xf32>
    %319 = arith.mulf %303, %311 : vector<2x32xf32>
    %320 = arith.addf %318, %319 : vector<2x32xf32>
    %321 = math.tanh %320 : vector<2x32xf32>
    %322 = arith.mulf %317, %321 : vector<2x32xf32>
    %c4 = arith.constant 4 : index
    %c0_72 = arith.constant 0 : index
    %c0_73 = arith.constant 0 : index
    %323 = vector.load %arg7[%c4, %c0_72, %c0_73] : memref<8x2x32xf32, #tpu.memory_space<vmem>>, vector<1x2x32xf32>
    %324 = vector.shape_cast %323 : vector<1x2x32xf32> to vector<2x32xf32>
    %325 = vector.shape_cast %322 : vector<2x32xf32> to vector<1x2x32xf32>
    tpu.vector_store %arg7[%c4, %c0_72, %c0_73], %325 {strides = array<i32>} : memref<8x2x32xf32, #tpu.memory_space<vmem>>, vector<1x2x32xf32>,
    %326 = vector.extract_strided_slice %11 {offsets = [0, 5, 0], sizes = [2, 1, 128], strides = [1, 1, 1]} : vector<2x8x128xf32> to vector<2x1x128xf32>
    %327 = vector.shape_cast %326 : vector<2x1x128xf32> to vector<2x128xf32>
    %cst_74 = arith.constant dense<0.000000e+00> : vector<2x128xf32>
    %328 = tpu.matmul %292, %1, %cst_74 {dimension_numbers = #tpu.dot_dimension_numbers<[1], [0], [0], [1], [0, 0, 1, 1], [], []>} : vector<2x32xf32>, vector<32x128xf32>, vector<2x128xf32> -> vector<2x128xf32>
    %329 = arith.addf %327, %328 : vector<2x128xf32>
    %330 = vector.extract_strided_slice %329 {offsets = [0, 0], sizes = [2, 32], strides = [1, 1]} : vector<2x128xf32> to vector<2x32xf32>
    %331 = arith.negf %330 : vector<2x32xf32>
    %332 = math.exp %331 : vector<2x32xf32>
    %cst_75 = arith.constant 1.000000e+00 : f32
    %333 = vector.broadcast %cst_75 : f32 to vector<2x32xf32>
    %334 = arith.addf %333, %332 : vector<2x32xf32>
    %335 = arith.divf %333, %334 : vector<2x32xf32>
    %336 = vector.extract_strided_slice %329 {offsets = [0, 32], sizes = [2, 32], strides = [1, 1]} : vector<2x128xf32> to vector<2x32xf32>
    %337 = arith.negf %336 : vector<2x32xf32>
    %338 = math.exp %337 : vector<2x32xf32>
    %cst_76 = arith.constant 1.000000e+00 : f32
    %339 = vector.broadcast %cst_76 : f32 to vector<2x32xf32>
    %340 = arith.addf %339, %338 : vector<2x32xf32>
    %341 = arith.divf %339, %340 : vector<2x32xf32>
    %342 = vector.extract_strided_slice %329 {offsets = [0, 64], sizes = [2, 32], strides = [1, 1]} : vector<2x128xf32> to vector<2x32xf32>
    %343 = math.tanh %342 : vector<2x32xf32>
    %344 = vector.extract_strided_slice %329 {offsets = [0, 96], sizes = [2, 32], strides = [1, 1]} : vector<2x128xf32> to vector<2x32xf32>
    %345 = arith.negf %344 : vector<2x32xf32>
    %346 = math.exp %345 : vector<2x32xf32>
    %cst_77 = arith.constant 1.000000e+00 : f32
    %347 = vector.broadcast %cst_77 : f32 to vector<2x32xf32>
    %348 = arith.addf %347, %346 : vector<2x32xf32>
    %349 = arith.divf %347, %348 : vector<2x32xf32>
    %350 = arith.mulf %341, %290 : vector<2x32xf32>
    %351 = arith.mulf %335, %343 : vector<2x32xf32>
    %352 = arith.addf %350, %351 : vector<2x32xf32>
    %353 = math.tanh %352 : vector<2x32xf32>
    %354 = arith.mulf %349, %353 : vector<2x32xf32>
    %cst_78 = arith.constant dense<0.000000e+00> : vector<2x128xf32>
    %355 = tpu.matmul %354, %3, %cst_78 {dimension_numbers = #tpu.dot_dimension_numbers<[1], [0], [0], [1], [0, 0, 1, 1], [], []>} : vector<2x32xf32>, vector<32x128xf32>, vector<2x128xf32> -> vector<2x128xf32>
    %cst_79 = arith.constant dense<0.000000e+00> : vector<2x128xf32>
    %356 = tpu.matmul %322, %4, %cst_79 {dimension_numbers = #tpu.dot_dimension_numbers<[1], [0], [0], [1], [0, 0, 1, 1], [], []>} : vector<2x32xf32>, vector<32x128xf32>, vector<2x128xf32> -> vector<2x128xf32>
    %357 = arith.addf %355, %356 : vector<2x128xf32>
    %358 = vector.broadcast %5 : vector<1x128xf32> to vector<2x128xf32>
    %359 = arith.addf %357, %358 : vector<2x128xf32>
    %360 = vector.extract_strided_slice %359 {offsets = [0, 0], sizes = [2, 32], strides = [1, 1]} : vector<2x128xf32> to vector<2x32xf32>
    %361 = arith.negf %360 : vector<2x32xf32>
    %362 = math.exp %361 : vector<2x32xf32>
    %cst_80 = arith.constant 1.000000e+00 : f32
    %363 = vector.broadcast %cst_80 : f32 to vector<2x32xf32>
    %364 = arith.addf %363, %362 : vector<2x32xf32>
    %365 = arith.divf %363, %364 : vector<2x32xf32>
    %366 = vector.extract_strided_slice %359 {offsets = [0, 32], sizes = [2, 32], strides = [1, 1]} : vector<2x128xf32> to vector<2x32xf32>
    %367 = arith.negf %366 : vector<2x32xf32>
    %368 = math.exp %367 : vector<2x32xf32>
    %cst_81 = arith.constant 1.000000e+00 : f32
    %369 = vector.broadcast %cst_81 : f32 to vector<2x32xf32>
    %370 = arith.addf %369, %368 : vector<2x32xf32>
    %371 = arith.divf %369, %370 : vector<2x32xf32>
    %372 = vector.extract_strided_slice %359 {offsets = [0, 64], sizes = [2, 32], strides = [1, 1]} : vector<2x128xf32> to vector<2x32xf32>
    %373 = math.tanh %372 : vector<2x32xf32>
    %374 = vector.extract_strided_slice %359 {offsets = [0, 96], sizes = [2, 32], strides = [1, 1]} : vector<2x128xf32> to vector<2x32xf32>
    %375 = arith.negf %374 : vector<2x32xf32>
    %376 = math.exp %375 : vector<2x32xf32>
    %cst_82 = arith.constant 1.000000e+00 : f32
    %377 = vector.broadcast %cst_82 : f32 to vector<2x32xf32>
    %378 = arith.addf %377, %376 : vector<2x32xf32>
    %379 = arith.divf %377, %378 : vector<2x32xf32>
    %380 = arith.mulf %371, %320 : vector<2x32xf32>
    %381 = arith.mulf %365, %373 : vector<2x32xf32>
    %382 = arith.addf %380, %381 : vector<2x32xf32>
    %383 = math.tanh %382 : vector<2x32xf32>
    %384 = arith.mulf %379, %383 : vector<2x32xf32>
    %c5 = arith.constant 5 : index
    %c0_83 = arith.constant 0 : index
    %c0_84 = arith.constant 0 : index
    %385 = vector.load %arg7[%c5, %c0_83, %c0_84] : memref<8x2x32xf32, #tpu.memory_space<vmem>>, vector<1x2x32xf32>
    %386 = vector.shape_cast %385 : vector<1x2x32xf32> to vector<2x32xf32>
    %387 = vector.shape_cast %384 : vector<2x32xf32> to vector<1x2x32xf32>
    tpu.vector_store %arg7[%c5, %c0_83, %c0_84], %387 {strides = array<i32>} : memref<8x2x32xf32, #tpu.memory_space<vmem>>, vector<1x2x32xf32>,
    %388 = vector.extract_strided_slice %11 {offsets = [0, 6, 0], sizes = [2, 1, 128], strides = [1, 1, 1]} : vector<2x8x128xf32> to vector<2x1x128xf32>
    %389 = vector.shape_cast %388 : vector<2x1x128xf32> to vector<2x128xf32>
    %cst_85 = arith.constant dense<0.000000e+00> : vector<2x128xf32>
    %390 = tpu.matmul %354, %1, %cst_85 {dimension_numbers = #tpu.dot_dimension_numbers<[1], [0], [0], [1], [0, 0, 1, 1], [], []>} : vector<2x32xf32>, vector<32x128xf32>, vector<2x128xf32> -> vector<2x128xf32>
    %391 = arith.addf %389, %390 : vector<2x128xf32>
    %392 = vector.extract_strided_slice %391 {offsets = [0, 0], sizes = [2, 32], strides = [1, 1]} : vector<2x128xf32> to vector<2x32xf32>
    %393 = arith.negf %392 : vector<2x32xf32>
    %394 = math.exp %393 : vector<2x32xf32>
    %cst_86 = arith.constant 1.000000e+00 : f32
    %395 = vector.broadcast %cst_86 : f32 to vector<2x32xf32>
    %396 = arith.addf %395, %394 : vector<2x32xf32>
    %397 = arith.divf %395, %396 : vector<2x32xf32>
    %398 = vector.extract_strided_slice %391 {offsets = [0, 32], sizes = [2, 32], strides = [1, 1]} : vector<2x128xf32> to vector<2x32xf32>
    %399 = arith.negf %398 : vector<2x32xf32>
    %400 = math.exp %399 : vector<2x32xf32>
    %cst_87 = arith.constant 1.000000e+00 : f32
    %401 = vector.broadcast %cst_87 : f32 to vector<2x32xf32>
    %402 = arith.addf %401, %400 : vector<2x32xf32>
    %403 = arith.divf %401, %402 : vector<2x32xf32>
    %404 = vector.extract_strided_slice %391 {offsets = [0, 64], sizes = [2, 32], strides = [1, 1]} : vector<2x128xf32> to vector<2x32xf32>
    %405 = math.tanh %404 : vector<2x32xf32>
    %406 = vector.extract_strided_slice %391 {offsets = [0, 96], sizes = [2, 32], strides = [1, 1]} : vector<2x128xf32> to vector<2x32xf32>
    %407 = arith.negf %406 : vector<2x32xf32>
    %408 = math.exp %407 : vector<2x32xf32>
    %cst_88 = arith.constant 1.000000e+00 : f32
    %409 = vector.broadcast %cst_88 : f32 to vector<2x32xf32>
    %410 = arith.addf %409, %408 : vector<2x32xf32>
    %411 = arith.divf %409, %410 : vector<2x32xf32>
    %412 = arith.mulf %403, %352 : vector<2x32xf32>
    %413 = arith.mulf %397, %405 : vector<2x32xf32>
    %414 = arith.addf %412, %413 : vector<2x32xf32>
    %415 = math.tanh %414 : vector<2x32xf32>
    %416 = arith.mulf %411, %415 : vector<2x32xf32>
    %cst_89 = arith.constant dense<0.000000e+00> : vector<2x128xf32>
    %417 = tpu.matmul %416, %3, %cst_89 {dimension_numbers = #tpu.dot_dimension_numbers<[1], [0], [0], [1], [0, 0, 1, 1], [], []>} : vector<2x32xf32>, vector<32x128xf32>, vector<2x128xf32> -> vector<2x128xf32>
    %cst_90 = arith.constant dense<0.000000e+00> : vector<2x128xf32>
    %418 = tpu.matmul %384, %4, %cst_90 {dimension_numbers = #tpu.dot_dimension_numbers<[1], [0], [0], [1], [0, 0, 1, 1], [], []>} : vector<2x32xf32>, vector<32x128xf32>, vector<2x128xf32> -> vector<2x128xf32>
    %419 = arith.addf %417, %418 : vector<2x128xf32>
    %420 = vector.broadcast %5 : vector<1x128xf32> to vector<2x128xf32>
    %421 = arith.addf %419, %420 : vector<2x128xf32>
    %422 = vector.extract_strided_slice %421 {offsets = [0, 0], sizes = [2, 32], strides = [1, 1]} : vector<2x128xf32> to vector<2x32xf32>
    %423 = arith.negf %422 : vector<2x32xf32>
    %424 = math.exp %423 : vector<2x32xf32>
    %cst_91 = arith.constant 1.000000e+00 : f32
    %425 = vector.broadcast %cst_91 : f32 to vector<2x32xf32>
    %426 = arith.addf %425, %424 : vector<2x32xf32>
    %427 = arith.divf %425, %426 : vector<2x32xf32>
    %428 = vector.extract_strided_slice %421 {offsets = [0, 32], sizes = [2, 32], strides = [1, 1]} : vector<2x128xf32> to vector<2x32xf32>
    %429 = arith.negf %428 : vector<2x32xf32>
    %430 = math.exp %429 : vector<2x32xf32>
    %cst_92 = arith.constant 1.000000e+00 : f32
    %431 = vector.broadcast %cst_92 : f32 to vector<2x32xf32>
    %432 = arith.addf %431, %430 : vector<2x32xf32>
    %433 = arith.divf %431, %432 : vector<2x32xf32>
    %434 = vector.extract_strided_slice %421 {offsets = [0, 64], sizes = [2, 32], strides = [1, 1]} : vector<2x128xf32> to vector<2x32xf32>
    %435 = math.tanh %434 : vector<2x32xf32>
    %436 = vector.extract_strided_slice %421 {offsets = [0, 96], sizes = [2, 32], strides = [1, 1]} : vector<2x128xf32> to vector<2x32xf32>
    %437 = arith.negf %436 : vector<2x32xf32>
    %438 = math.exp %437 : vector<2x32xf32>
    %cst_93 = arith.constant 1.000000e+00 : f32
    %439 = vector.broadcast %cst_93 : f32 to vector<2x32xf32>
    %440 = arith.addf %439, %438 : vector<2x32xf32>
    %441 = arith.divf %439, %440 : vector<2x32xf32>
    %442 = arith.mulf %433, %382 : vector<2x32xf32>
    %443 = arith.mulf %427, %435 : vector<2x32xf32>
    %444 = arith.addf %442, %443 : vector<2x32xf32>
    %445 = math.tanh %444 : vector<2x32xf32>
    %446 = arith.mulf %441, %445 : vector<2x32xf32>
    %c6 = arith.constant 6 : index
    %c0_94 = arith.constant 0 : index
    %c0_95 = arith.constant 0 : index
    %447 = vector.load %arg7[%c6, %c0_94, %c0_95] : memref<8x2x32xf32, #tpu.memory_space<vmem>>, vector<1x2x32xf32>
    %448 = vector.shape_cast %447 : vector<1x2x32xf32> to vector<2x32xf32>
    %449 = vector.shape_cast %446 : vector<2x32xf32> to vector<1x2x32xf32>
    tpu.vector_store %arg7[%c6, %c0_94, %c0_95], %449 {strides = array<i32>} : memref<8x2x32xf32, #tpu.memory_space<vmem>>, vector<1x2x32xf32>,
    %450 = vector.extract_strided_slice %11 {offsets = [0, 7, 0], sizes = [2, 1, 128], strides = [1, 1, 1]} : vector<2x8x128xf32> to vector<2x1x128xf32>
    %451 = vector.shape_cast %450 : vector<2x1x128xf32> to vector<2x128xf32>
    %cst_96 = arith.constant dense<0.000000e+00> : vector<2x128xf32>
    %452 = tpu.matmul %416, %1, %cst_96 {dimension_numbers = #tpu.dot_dimension_numbers<[1], [0], [0], [1], [0, 0, 1, 1], [], []>} : vector<2x32xf32>, vector<32x128xf32>, vector<2x128xf32> -> vector<2x128xf32>
    %453 = arith.addf %451, %452 : vector<2x128xf32>
    %454 = vector.extract_strided_slice %453 {offsets = [0, 0], sizes = [2, 32], strides = [1, 1]} : vector<2x128xf32> to vector<2x32xf32>
    %455 = arith.negf %454 : vector<2x32xf32>
    %456 = math.exp %455 : vector<2x32xf32>
    %cst_97 = arith.constant 1.000000e+00 : f32
    %457 = vector.broadcast %cst_97 : f32 to vector<2x32xf32>
    %458 = arith.addf %457, %456 : vector<2x32xf32>
    %459 = arith.divf %457, %458 : vector<2x32xf32>
    %460 = vector.extract_strided_slice %453 {offsets = [0, 32], sizes = [2, 32], strides = [1, 1]} : vector<2x128xf32> to vector<2x32xf32>
    %461 = arith.negf %460 : vector<2x32xf32>
    %462 = math.exp %461 : vector<2x32xf32>
    %cst_98 = arith.constant 1.000000e+00 : f32
    %463 = vector.broadcast %cst_98 : f32 to vector<2x32xf32>
    %464 = arith.addf %463, %462 : vector<2x32xf32>
    %465 = arith.divf %463, %464 : vector<2x32xf32>
    %466 = vector.extract_strided_slice %453 {offsets = [0, 64], sizes = [2, 32], strides = [1, 1]} : vector<2x128xf32> to vector<2x32xf32>
    %467 = math.tanh %466 : vector<2x32xf32>
    %468 = vector.extract_strided_slice %453 {offsets = [0, 96], sizes = [2, 32], strides = [1, 1]} : vector<2x128xf32> to vector<2x32xf32>
    %469 = arith.negf %468 : vector<2x32xf32>
    %470 = math.exp %469 : vector<2x32xf32>
    %cst_99 = arith.constant 1.000000e+00 : f32
    %471 = vector.broadcast %cst_99 : f32 to vector<2x32xf32>
    %472 = arith.addf %471, %470 : vector<2x32xf32>
    %473 = arith.divf %471, %472 : vector<2x32xf32>
    %474 = arith.mulf %465, %414 : vector<2x32xf32>
    %475 = arith.mulf %459, %467 : vector<2x32xf32>
    %476 = arith.addf %474, %475 : vector<2x32xf32>
    %477 = math.tanh %476 : vector<2x32xf32>
    %478 = arith.mulf %473, %477 : vector<2x32xf32>
    %cst_100 = arith.constant dense<0.000000e+00> : vector<2x128xf32>
    %479 = tpu.matmul %478, %3, %cst_100 {dimension_numbers = #tpu.dot_dimension_numbers<[1], [0], [0], [1], [0, 0, 1, 1], [], []>} : vector<2x32xf32>, vector<32x128xf32>, vector<2x128xf32> -> vector<2x128xf32>
    %cst_101 = arith.constant dense<0.000000e+00> : vector<2x128xf32>
    %480 = tpu.matmul %446, %4, %cst_101 {dimension_numbers = #tpu.dot_dimension_numbers<[1], [0], [0], [1], [0, 0, 1, 1], [], []>} : vector<2x32xf32>, vector<32x128xf32>, vector<2x128xf32> -> vector<2x128xf32>
    %481 = arith.addf %479, %480 : vector<2x128xf32>
    %482 = vector.broadcast %5 : vector<1x128xf32> to vector<2x128xf32>
    %483 = arith.addf %481, %482 : vector<2x128xf32>
    %484 = vector.extract_strided_slice %483 {offsets = [0, 0], sizes = [2, 32], strides = [1, 1]} : vector<2x128xf32> to vector<2x32xf32>
    %485 = arith.negf %484 : vector<2x32xf32>
    %486 = math.exp %485 : vector<2x32xf32>
    %cst_102 = arith.constant 1.000000e+00 : f32
    %487 = vector.broadcast %cst_102 : f32 to vector<2x32xf32>
    %488 = arith.addf %487, %486 : vector<2x32xf32>
    %489 = arith.divf %487, %488 : vector<2x32xf32>
    %490 = vector.extract_strided_slice %483 {offsets = [0, 32], sizes = [2, 32], strides = [1, 1]} : vector<2x128xf32> to vector<2x32xf32>
    %491 = arith.negf %490 : vector<2x32xf32>
    %492 = math.exp %491 : vector<2x32xf32>
    %cst_103 = arith.constant 1.000000e+00 : f32
    %493 = vector.broadcast %cst_103 : f32 to vector<2x32xf32>
    %494 = arith.addf %493, %492 : vector<2x32xf32>
    %495 = arith.divf %493, %494 : vector<2x32xf32>
    %496 = vector.extract_strided_slice %483 {offsets = [0, 64], sizes = [2, 32], strides = [1, 1]} : vector<2x128xf32> to vector<2x32xf32>
    %497 = math.tanh %496 : vector<2x32xf32>
    %498 = vector.extract_strided_slice %483 {offsets = [0, 96], sizes = [2, 32], strides = [1, 1]} : vector<2x128xf32> to vector<2x32xf32>
    %499 = arith.negf %498 : vector<2x32xf32>
    %500 = math.exp %499 : vector<2x32xf32>
    %cst_104 = arith.constant 1.000000e+00 : f32
    %501 = vector.broadcast %cst_104 : f32 to vector<2x32xf32>
    %502 = arith.addf %501, %500 : vector<2x32xf32>
    %503 = arith.divf %501, %502 : vector<2x32xf32>
    %504 = arith.mulf %495, %444 : vector<2x32xf32>
    %505 = arith.mulf %489, %497 : vector<2x32xf32>
    %506 = arith.addf %504, %505 : vector<2x32xf32>
    %507 = math.tanh %506 : vector<2x32xf32>
    %508 = arith.mulf %503, %507 : vector<2x32xf32>
    %c7 = arith.constant 7 : index
    %c0_105 = arith.constant 0 : index
    %c0_106 = arith.constant 0 : index
    %509 = vector.load %arg7[%c7, %c0_105, %c0_106] : memref<8x2x32xf32, #tpu.memory_space<vmem>>, vector<1x2x32xf32>
    %510 = vector.shape_cast %509 : vector<1x2x32xf32> to vector<2x32xf32>
    %511 = vector.shape_cast %508 : vector<2x32xf32> to vector<1x2x32xf32>
    tpu.vector_store %arg7[%c7, %c0_105, %c0_106], %511 {strides = array<i32>} : memref<8x2x32xf32, #tpu.memory_space<vmem>>, vector<1x2x32xf32>,
    return
  }
}

</mosaic_0001>

<bundles_post_ra>
// kernel: _fused_lstm_forward.1
= control target key start
LH: loop header
LB: loop body
LE: loop exit
PB: predicated region body
PF: predicated region fallthrough
CT: control target
= control target key end

     0   :  { %12 = vsyncpa [#allocation3], 0  ;;  %s4152_s0 = inlined_call_operand.hbm [shape: f32[2,8,64], index: 0, kind: input, shape index: {}]   ;;  %s4153_s1 = inlined_call_operand.hbm [shape: f32[64,128], index: 1, kind: input, shape index: {}]   ;;  %s4154_s2 = inlined_call_operand.hbm [shape: f32[32,128], index: 2, kind: input, shape index: {}]   ;;  %s4155_s3 = inlined_call_operand.vmem [shape: f32[1,128], index: 3, kind: input, shape index: {}]   ;;  %s4156_s4 = inlined_call_operand.hbm [shape: f32[32,128], index: 4, kind: input, shape index: {}]   ;;  %s4157_s5 = inlined_call_operand.hbm [shape: f32[32,128], index: 5, kind: input, shape index: {}]   ;;  %s4158_s6 = inlined_call_operand.vmem [shape: f32[1,128], index: 6, kind: input, shape index: {}]   ;;  %s4159_s7 = inlined_call_operand.vmem [shape: f32[8,2,32], index: 7, kind: output, shape index: {}]  }
   0x1   :  { %13 = vsyncpa [#allocation5], 0 }
   0x2   :  { %14 = vsyncpa [#allocation8], 0  ;;  %s3508_s24 = smov [#allocation4]   ;;  %s3509_s26 = smov [#allocation7]  }
   0x3   :  { %s32_s25 = sshll.u32 %s3508_s24, 4  ;;  %s58_s27 = sshll.u32 %s3509_s26, 4  ;;  %s33_s25 = int_to_ptr.vmem [resolvable:$true] %s32_s25  ;;  %s59_s27 = int_to_ptr.vmem [resolvable:$true] %s58_s27 }
   0x4   :  { %s3410_s28 = scalar_lea.vmem %s33_s25, 1024  ;;  %p3415_p1 = scmp.lt.s32.totalorder %s33_s25, %s33_s25 }
   0x5   :  { %p3411_p0 = scmp.ne.s32.totalorder %s33_s25, %s3410_s28  ;;  %p3416_p2 = scmp.lt.s32.totalorder %s3410_s28, %s3410_s28 }
   0x7   :  { %p3417_p3 = por %p3416_p2, %p3415_p1 }
   0x9   :  { %p3418_p4 = pnand %p3417_p3, %p3411_p0 }
   0xb   :  { %3421 = shalt.err (!%p3418_p4)
}
   0xc   :  { %s3510_s29 = smov 128   ;;  %s3511_s30 = smov 8  }
   0xd   :  { %38 = dma.hbm_to_vmem [thread:$0]  %s4153_s1, 1024, %s33_s25, [#allocation5], %s3510_s29, %s3510_s29, %s3511_s30  }
   0xe   :  { %s3430_s10 = scalar_lea.vmem %s59_s27, 512  ;;  %p3435_p6 = scmp.lt.s32.totalorder %s59_s27, %s59_s27 }
   0xf   :  { %p3431_p5 = scmp.ne.s32.totalorder %s59_s27, %s3430_s10  ;;  %p3436_p7 = scmp.lt.s32.totalorder %s3430_s10, %s3430_s10 }
  0x11   :  { %p3437_p8 = por %p3436_p7, %p3435_p6 }
  0x13   :  { %p3438_p9 = pnand %p3437_p8, %p3431_p5 }
  0x15   :  { %3441 = shalt.err (!%p3438_p9)
}
  0x16   :  { %64 = dma.hbm_to_vmem [thread:$0]  %s4156_s4, 512, %s59_s27, [#allocation8], %s3510_s29, %s3510_s29, %s3511_s30  }
  0x17   :  { %s3512_s13 = smov [#allocation2]   ;;  %s3513_s15 = smov [#allocation6]  }
  0x18   :  { %s20_s14 = sshll.u32 %s3512_s13, 4  ;;  %s44_s16 = sshll.u32 %s3513_s15, 4  ;;  %s21_s14 = int_to_ptr.vmem [resolvable:$true] %s20_s14  ;;  %s45_s16 = int_to_ptr.vmem [resolvable:$true] %s44_s16 }
  0x19   :  { %s3450_s1 = scalar_lea.vmem %s21_s14, 256  ;;  %p3455_p11 = scmp.lt.s32.totalorder %s21_s14, %s21_s14 }
  0x1a   :  { %p3451_p10 = scmp.ne.s32.totalorder %s21_s14, %s3450_s1  ;;  %p3456_p12 = scmp.lt.s32.totalorder %s3450_s1, %s3450_s1 }
  0x1c   :  { %p3457_p13 = por %p3456_p12, %p3455_p11 }
  0x1e   :  { %p3458_p0 = pnand %p3457_p13, %p3451_p10 }
  0x20   :  { %3461 = shalt.err (!%p3458_p0)
}
  0x21   :  { %26 = dma.hbm_to_vmem [thread:$0]  %s4152_s0, 256, %s21_s14, [#allocation3], %s3510_s29, %s3510_s29, %s3511_s30  }
  0x22   :  { %s3470_s4 = scalar_lea.vmem %s45_s16, 512  ;;  %p3475_p2 = scmp.lt.s32.totalorder %s45_s16, %s45_s16 }
  0x23   :  { %p3471_p1 = scmp.ne.s32.totalorder %s45_s16, %s3470_s4  ;;  %p3476_p3 = scmp.lt.s32.totalorder %s3470_s4, %s3470_s4 }
  0x25   :  { %p3477_p4 = por %p3476_p3, %p3475_p2 }
  0x27   :  { %p3478_p5 = pnand %p3477_p4, %p3471_p1 }
  0x29   :  { %3481 = shalt.err (!%p3478_p5)
}
  0x2a   :  { %50 = dma.hbm_to_vmem [thread:$0]  %s4154_s2, 512, %s45_s16, [#allocation5], %s3510_s29, %s3510_s29, %s3511_s30  }
  0x2b   :  { %s3514_s21 = smov [#allocation9]  }
  0x2c   :  { %s70_s22 = sshll.u32 %s3514_s21, 4  ;;  %s71_s22 = int_to_ptr.vmem [resolvable:$true] %s70_s22 }
  0x2d   :  { %s3490_s23 = scalar_lea.vmem %s71_s22, 512  ;;  %p3495_p7 = scmp.lt.s32.totalorder %s71_s22, %s71_s22 }
  0x2e   :  { %p3491_p6 = scmp.ne.s32.totalorder %s71_s22, %s3490_s23  ;;  %p3496_p8 = scmp.lt.s32.totalorder %s3490_s23, %s3490_s23 }
  0x30   :  { %p3497_p9 = por %p3496_p8, %p3495_p7 }
  0x32   :  { %p3498_p10 = pnand %p3497_p9, %p3491_p6 }
  0x34   :  { %3501 = shalt.err (!%p3498_p10)
}
  0x35   :  { %76 = dma.hbm_to_vmem [thread:$0]  %s4157_s5, 512, %s71_s22, [#allocation8], %s3510_s29, %s3510_s29, %s3511_s30  }
  0x36   :  { %3502 = dma.done.wait [#allocation3], 256  }
  0x37   :  { %3503 = vsyncadd [#allocation3], 4294967040 }
  0x38   :  { %3504 = dma.done.wait [#allocation5], 1536  }
  0x39   :  { %3505 = vsyncadd [#allocation5], 4294965760 }
  0x3a   :  { %3506 = dma.done.wait [#allocation8], 1024  }
  0x3b   :  { %3507 = vsyncadd [#allocation8], 4294966272  ;;  %v3515_v0 = vmov 0.0   ;;  %vm3516_vm0 = vmmov 0   ;;  %v101_v1 = vld [vmem:[#allocation4 + $0x38] sm:$0xff]  ;;  %v100_v2 = vld [vmem:[#allocation4 + $0x30] sm:$0xff] }
  0x3c   :  { %2922 = vmatprep.subr.mxu1 %v3515_v0  ;;  %2930 = vmatprep.mubr.msk.f32.mxu1 %vm3516_vm0, %v3515_v0  ;;  %v3592_v3 = vld [vmem:[#allocation6 + $0x18] sm:$0xff]  ;;  %v99_v4 = vld [vmem:[#allocation4 + $0x28] sm:$0xff]  ;;  %v3595_v5 = vld [vmem:[#allocation6 + $0x10] sm:$0xff]  ;;  %vm124_vm1 = vcmask 523264   ;;  %s3517_s25 = smov 64   ;;  %vm407_vm2 = vcmask 1041409  }
  0x3d   :  { %2903 = vmatprep.subr.mxu0 %v101_v1  ;;  %2923 = vmatpush3.msra.mxu1 %v3592_v3  ;;  %v3598_v6 = vld [vmem:[#allocation6 + $0x8] sm:$0xff]  ;;  %v98_v7 = vld [vmem:[#allocation4 + $0x20] sm:$0xff]  ;;  %v97_v9 = vld [vmem:[#allocation4 + $0x18] sm:$0xff]  ;;  %vm206_vm3 = vcmask 261120   ;;  %vm518_vm4 = vcmask 254976  }
  0x3e   :  { %2904 = vmatpush3.msra.mxu0 %v101_v1  ;;  %2924 = vmatprep.subr.mxu1 %v3515_v0  ;;  %v3602_v8 = vld [vmem:[#allocation6] sm:$0xff]  ;;  %v116_v10 = vld [vmem:[#allocation2] sm:$0xff]  ;;  %v95_v12 = vld [vmem:[#allocation4 + $0x8] sm:$0xff] }
  0x3f   :  { %2905 = vmatprep.subr.mxu0 %v100_v2  ;;  %2925 = vmatpush3.msra.mxu1 %v3595_v5  ;;  %v96_v11 = vld [vmem:[#allocation4 + $0x10] sm:$0xff]  ;;  %v94_v13 = vld [vmem:[#allocation4] sm:$0xff]  ;;  %v117_v14 = vld [vmem:[#allocation2 + $0x8] sm:$0xff] }
  0x40   :  { %2906 = vmatpush3.msra.mxu0 %v100_v2  ;;  %2926 = vmatprep.subr.mxu1 %v3515_v0  ;;  %v2716_v17 = vld [vmem:[%s4155_s3] ss:$0 sm:$0xff]  ;;  %s3518_s3 = smov 32   ;;  %v3635_v45 = vld [vmem:[#allocation9 + $0x18] sm:$0xff]  ;;  %v3645_v49 = vld [vmem:[#allocation9 + $0x8] sm:$0xff] }
  0x41   :  { %2907 = vmatprep.subr.mxu0 %v99_v4  ;;  %2927 = vmatpush3.msra.mxu1 %v3598_v6  ;;  %v3637_v46 = vld [vmem:[#allocation9 + $0x10] sm:$0xff]  ;;  %v3640_v47 = vld [vmem:[#allocation7 + $0x18] sm:$0xff]  ;;  %v3651_v50 = vld [vmem:[#allocation9] sm:$0xff] }
  0x42   :  { %2908 = vmatpush3.msra.mxu0 %v99_v4  ;;  %2928 = vmatprep.subr.mxu1 %v3515_v0  ;;  %v3642_v48 = vld [vmem:[#allocation7 + $0x10] sm:$0xff]  ;;  %v3654_v51 = vld [vmem:[#allocation7 + $0x8] sm:$0xff]  ;;  %v3664_v53 = vld [vmem:[#allocation7] sm:$0xff] }
  0x43   :  { %2909 = vmatprep.subr.mxu0 %v98_v7  ;;  %2929 = vmatpush3.msra.mxu1 %v3602_v8  ;;  %v3707_v1 = vld [vmem:[%s4158_s6] ss:$0 sm:$0xff] }
  0x44   :  { %2910 = vmatpush3.msra.mxu0 %v98_v7  ;;  %2931 = vmatmul.mubr.f32.vlgmr.msra.gmra.mxu1 %v3515_v0 }
  0x45   :  { %2911 = vmatprep.subr.mxu0 %v97_v9  ;;  %2919 = vmatprep.mubr.msk.f32.mxu0 %vm124_vm1, %v116_v10 }
  0x46   :  { %2912 = vmatpush3.msra.mxu0 %v97_v9  ;;  %2933 = vmatprep.subr.mxu1 %v3515_v0 }
  0x47   :  { %2913 = vmatprep.subr.mxu0 %v96_v11  ;;  %2941 = vmatprep.mubr.msk.f32.mxu1 %vm3516_vm0, %v3515_v0 }
  0x48   :  { %2914 = vmatpush3.msra.mxu0 %v96_v11  ;;  %2934 = vmatpush3.msra.mxu1 %v3635_v45 }
  0x49   :  { %2915 = vmatprep.subr.mxu0 %v95_v12  ;;  %2935 = vmatprep.subr.mxu1 %v3515_v0 }
  0x4a   :  { %2916 = vmatpush3.msra.mxu0 %v95_v12  ;;  %2936 = vmatpush3.msra.mxu1 %v3637_v46 }
  0x4b   :  { %2917 = vmatprep.subr.mxu0 %v94_v13  ;;  %2937 = vmatprep.subr.mxu1 %v3515_v0 }
  0x4c   :  { %2918 = vmatpush3.msra.mxu0 %v94_v13  ;;  %2938 = vmatpush3.msra.mxu1 %v3645_v49 }
  0x4d   :  { %2920 = vmatmul.mubr.msk.f32.vlgmr.msra.gmra.mxu0 %vm124_vm1, %v117_v14  ;;  %2944 = vmatprep.subr.mxu0 %v3515_v0 }
  0x4e   :  { %2952 = vmatprep.mubr.msk.f32.mxu0 %vm3516_vm0, %v3515_v0  ;;  %2945 = vmatpush3.msra.mxu0 %v3640_v47 }
  0x4f   :  { %2946 = vmatprep.subr.mxu0 %v3515_v0  ;;  %2939 = vmatprep.subr.mxu1 %v3515_v0 }
  0x50   :  { %2947 = vmatpush3.msra.mxu0 %v3642_v48  ;;  %2940 = vmatpush3.msra.mxu1 %v3651_v50 }
  0x51   :  { %2948 = vmatprep.subr.mxu0 %v3515_v0  ;;  %2955 = vmatprep.subr.mxu1 %v3515_v0 }
  0x52   :  { %2949 = vmatpush3.msra.mxu0 %v3654_v51  ;;  %2942 = vmatmul.mubr.f32.vlgmr.msra.gmra.mxu1 %v3515_v0 }
  0x53   :  { %2956 = vmatpush3.msra.mxu1 %v3592_v3  ;;  %2950 = vmatprep.subr.mxu0 %v3515_v0 }
  0x54   :  { %2957 = vmatprep.subr.mxu1 %v3515_v0  ;;  %2951 = vmatpush3.msra.mxu0 %v3664_v53 }
  0x55   :  { %2958 = vmatpush3.msra.mxu1 %v3595_v5  ;;  %2963 = vmatprep.mubr.msk.f32.mxu1 %vm3516_vm0, %v3515_v0 }
  0x56   :  { %2959 = vmatprep.subr.mxu1 %v3515_v0  ;;  %2966 = vmatprep.subr.mxu0 %v3515_v0 }
  0x57   :  { %2960 = vmatpush3.msra.mxu1 %v3598_v6 }
  0x58   :  { %2961 = vmatprep.subr.mxu1 %v3515_v0 }
  0x59   :  { %2962 = vmatpush3.msra.mxu1 %v3602_v8 }
  0x5a   :  { %2977 = vmatprep.subr.mxu1 %v3515_v0 }
 0x104   :  { %v276_v15 = vpop.f32.mrf.mxu1 }
 0x105   :  { %v281_v18 = vrot.slane %v276_v15, 1 }
 0x106   :  { %v2932_v16 = vpop.f32.mrf.mxu1 }
 0x10d   :  { %v2921_v19 = vpop.f32.mrf.mxu0 }
 0x10e   :  { %v3619_v20 = vadd.f32 %v2921_v19, %v2716_v17 }
 0x10f   :  { %v197_v21 = vpop.f32.mrf.mxu0 }
 0x110   :  { %v3621_v22 = vadd.f32 %v2716_v17, %v197_v21  ;;  %v285_v23 = vadd.f32 %v281_v18, %v3619_v20 }
 0x112   :  { %v284_v24 = vadd.f32 %v276_v15, %v3621_v22  ;;  %3197 = vtanh.f32 %v285_v23  ;;  %v2720_v27 = vmul.f32 -1.442695, %v285_v23  ;;  %v400_v61 = vpop.f32.mrf.mxu1 }
 0x114   :  { %3199 = vtanh.f32 %v284_v24  ;;  %v2719_v28 = vmul.f32 -1.442695, %v284_v24  ;;  %v2943_v62 = vpop.f32.mrf.mxu1 }
 0x115   :  { %3201 = vpow2.f32 %v2720_v27 }
 0x116   :  { %3203 = vpow2.f32 %v2719_v28 }
 0x11f   :  { %v3198_v25 = vpop.eup %3197 }
 0x120   :  { %306 = vrot.lane.b32.xlu0 %v3198_v25, %s3517_s25 }
 0x121   :  { %v3200_v26 = vpop.eup %3199 }
 0x122   :  { %v3202_v29 = vpop.eup %3201 }
 0x123   :  { %v293_v30 = vadd.f32 1.0, %v3202_v29  ;;  %v3204_v31 = vpop.eup %3203 }
 0x124   :  { %304 = vrot.lane.b32.xlu0 %v3200_v26, %s3517_s25  ;;  %v292_v32 = vadd.f32 1.0, %v3204_v31 }
 0x125   :  { %3205 = vrcp.f32 %v293_v30 }
 0x126   :  { %3207 = vrcp.f32 %v292_v32 }
 0x132   :  { %v3206_v33 = vpop.eup %3205 }
 0x133   :  { %v3208_v36 = vpop.eup %3207  ;;  %v301_v39 = vmul.f32 0.0, %v3206_v33 }
 0x134   :  { %v300_v42 = vmul.f32 0.0, %v3208_v36 }
 0x192   :  { %v307_v34 = vpop.permute.xlu0 %306 }
 0x193   :  { %v311_v35 = vmul.f32 %v3206_v33, %v307_v34 }
 0x195   :  { %316 = vrot.lane.b32.xlu1 %v311_v35, %s3518_s3 }
 0x196   :  { %v305_v37 = vpop.permute.xlu0 %304 }
 0x197   :  { %v310_v38 = vmul.f32 %v3208_v36, %v305_v37 }
 0x199   :  { %314 = vrot.lane.b32.xlu1 %v310_v38, %s3518_s3 }
 0x207   :  { %v317_v40 = vpop.permute.xlu1 %316 }
 0x208   :  { %v3629_v41 = vadd.f32 %v317_v40, %v301_v39 }
 0x20a   :  { %3209 = vtanh.f32 %v3629_v41  ;;  %v613_v40 = vrot.slane %v3629_v41, 7 }
 0x20b   :  { %v315_v43 = vpop.permute.xlu1 %314 }
 0x20c   :  { %v3632_v44 = vadd.f32 %v315_v43, %v300_v42 }
 0x20e   :  { %3211 = vtanh.f32 %v3632_v44  ;;  %v612_v42 = vrot.slane %v3632_v44, 7 }
 0x217   :  { %v3210_v52 = vpop.eup %3209 }
 0x218   :  { %328 = vrot.lane.b32.xlu0 %v3210_v52, %s3517_s25 }
 0x21b   :  { %v3212_v54 = vpop.eup %3211 }
 0x21c   :  { %326 = vrot.lane.b32.xlu1 %v3212_v54, %s3517_s25 }
 0x28a   :  { %v329_v55 = vpop.permute.xlu0 %328 }
 0x28b   :  { %v333_v56 = vmul.f32 %v3206_v33, %v329_v55 }
 0x28d   :  { %v406_v58 = vrot.slane %v333_v56, 7 }
 0x28e   :  { %v327_v57 = vpop.permute.xlu1 %326 }
 0x28f   :  { %v332_v59 = vmul.f32 %v3208_v36, %v327_v57 }
 0x291   :  { %v408_v60 = vsel %vm407_vm2, %v406_v58, %v332_v59 }
 0x292   :  { %409 = vrot.lane.b32.xlu0 %v408_v60, %s3518_s3 }
 0x304   :  { %v410_v63 = vpop.permute.xlu0 %409 }
 0x305   :  { %2953 = vmatmul.mubr.msk.f32.vlgmr.msra.gmra.mxu0 %vm206_vm3, %v410_v63  ;;  %2964 = vmatmul.mubr.msk.f32.vlgmr.msra.gmra.mxu1 %vm206_vm3, %v410_v63 }
 0x306   :  { %2967 = vmatpush3.msra.mxu0 %v3635_v45  ;;  %2978 = vmatpush3.msra.mxu1 %v3640_v47 }
 0x307   :  { %2968 = vmatprep.subr.mxu0 %v3515_v0  ;;  %2974 = vmatprep.mubr.msk.f32.mxu0 %vm3516_vm0, %v3515_v0 }
 0x308   :  { %2969 = vmatpush3.msra.mxu0 %v3637_v46  ;;  %2979 = vmatprep.subr.mxu1 %v3515_v0 }
 0x309   :  { %2970 = vmatprep.subr.mxu0 %v3515_v0  ;;  %2980 = vmatpush3.msra.mxu1 %v3642_v48 }
 0x30a   :  { %2971 = vmatpush3.msra.mxu0 %v3645_v49  ;;  %2981 = vmatprep.subr.mxu1 %v3515_v0 }
 0x30b   :  { %2972 = vmatprep.subr.mxu0 %v3515_v0  ;;  %2982 = vmatpush3.msra.mxu1 %v3654_v51 }
 0x30c   :  { %2973 = vmatpush3.msra.mxu0 %v3651_v50  ;;  %2983 = vmatprep.subr.mxu1 %v3515_v0 }
 0x30d   :  { %2988 = vmatprep.subr.mxu0 %v3515_v0  ;;  %2984 = vmatpush3.msra.mxu1 %v3664_v53 }
 0x30e   :  { %2985 = vmatprep.mubr.msk.f32.mxu1 %vm3516_vm0, %v3515_v0  ;;  %2999 = vmatprep.subr.mxu1 %v3515_v0 }
 0x3c5   :  { %v479_v2 = vpop.f32.mrf.mxu0  ;;  %v586_v4 = vpop.f32.mrf.mxu1 }
 0x3c6   :  { %v480_v7 = vadd.f32 %v479_v2, %v400_v61  ;;  %v591_v9 = vrot.slane %v586_v4, 7  ;;  %v595_v13 = vadd.f32 %v586_v4, %v3619_v20 }
 0x3c7   :  { %v2954_v10 = vpop.f32.mrf.mxu0  ;;  %v2965_v11 = vpop.f32.mrf.mxu1 }
 0x3c8   :  { %v489_v12 = vadd.f32 %v3707_v1, %v480_v7  ;;  %v594_v14 = vadd.f32 %v591_v9, %v3621_v22  ;;  %v2726_v19 = vmul.f32 -1.442695, %v595_v13 }
 0x3ca   :  { %3213 = vtanh.f32 %v489_v12  ;;  %v2723_v18 = vmul.f32 -1.442695, %v489_v12  ;;  %v2725_v21 = vmul.f32 -1.442695, %v594_v14 }
 0x3cb   :  { %3215 = vtanh.f32 %v595_v13 }
 0x3cc   :  { %3217 = vtanh.f32 %v594_v14 }
 0x3cd   :  { %3219 = vpow2.f32 %v2723_v18 }
 0x3ce   :  { %3221 = vpow2.f32 %v2726_v19 }
 0x3cf   :  { %3223 = vpow2.f32 %v2725_v21 }
 0x3d7   :  { %v3214_v15 = vpop.eup %3213 }
 0x3d8   :  { %499 = vrot.lane.b32.xlu1 %v3214_v15, %s3517_s25  ;;  %v3216_v16 = vpop.eup %3215 }
 0x3d9   :  { %v3218_v17 = vpop.eup %3217 }
 0x3da   :  { %620 = vrot.lane.b32.xlu0 %v3218_v17, %s3517_s25  ;;  %v3220_v23 = vpop.eup %3219 }
 0x3db   :  { %v3222_v24 = vpop.eup %3221  ;;  %v493_v25 = vadd.f32 1.0, %v3220_v23 }
 0x3dc   :  { %622 = vrot.lane.b32.xlu1 %v3216_v16, %s3517_s25  ;;  %v3224_v26 = vpop.eup %3223  ;;  %v603_v27 = vadd.f32 1.0, %v3222_v24 }
 0x3dd   :  { %3225 = vrcp.f32 %v493_v25  ;;  %v602_v28 = vadd.f32 1.0, %v3224_v26 }
 0x3de   :  { %3227 = vrcp.f32 %v603_v27 }
 0x3df   :  { %3229 = vrcp.f32 %v602_v28 }
 0x3ea   :  { %v3226_v29 = vpop.eup %3225 }
 0x3eb   :  { %v3228_v32 = vpop.eup %3227  ;;  %v497_v38 = vmul.f32 0.0, %v3226_v29 }
 0x3ec   :  { %v3230_v33 = vpop.eup %3229  ;;  %v617_v54 = vmul.f32 %v3228_v32, %v613_v40 }
 0x3ed   :  { %v616_v52 = vmul.f32 %v3230_v33, %v612_v42 }
 0x44a   :  { %v500_v30 = vpop.permute.xlu1 %499 }
 0x44b   :  { %v502_v31 = vmul.f32 %v3226_v29, %v500_v30 }
 0x44c   :  { %v621_v34 = vpop.permute.xlu0 %620 }
 0x44d   :  { %504 = vrot.lane.b32.xlu0 %v502_v31, %s3518_s3  ;;  %v626_v36 = vmul.f32 %v3230_v33, %v621_v34 }
 0x44e   :  { %v623_v35 = vpop.permute.xlu1 %622 }
 0x44f   :  { %v627_v37 = vmul.f32 %v3228_v32, %v623_v35  ;;  %630 = vrot.lane.b32.xlu1 %v626_v36, %s3518_s3 }
 0x451   :  { %632 = vrot.lane.b32.xlu0 %v627_v37, %s3518_s3 }
 0x4bf   :  { %v505_v39 = vpop.permute.xlu0 %504 }
 0x4c0   :  { %v3720_v43 = vadd.f32 %v505_v39, %v497_v38 }
 0x4c1   :  { %v631_v55 = vpop.permute.xlu1 %630 }
 0x4c2   :  { %3231 = vtanh.f32 %v3720_v43  ;;  %v3723_v57 = vadd.f32 %v631_v55, %v616_v52 }
 0x4c3   :  { %v633_v56 = vpop.permute.xlu0 %632 }
 0x4c4   :  { %v3725_v58 = vadd.f32 %v633_v56, %v617_v54  ;;  %3233 = vtanh.f32 %v3723_v57 }
 0x4c6   :  { %3235 = vtanh.f32 %v3725_v58 }
 0x4cf   :  { %v3232_v59 = vpop.eup %3231 }
 0x4d0   :  { %510 = vrot.lane.b32.xlu1 %v3232_v59, %s3517_s25 }
 0x4d1   :  { %v3234_v41 = vpop.eup %3233 }
 0x4d2   :  { %642 = vrot.lane.b32.xlu0 %v3234_v41, %s3517_s25  ;;  %v924_v41 = vrot.slane %v3723_v57, 7 }
 0x4d3   :  { %v3236_v44 = vpop.eup %3235 }
 0x4d4   :  { %644 = vrot.lane.b32.xlu1 %v3236_v44, %s3517_s25 }
 0x542   :  { %v511_v60 = vpop.permute.xlu1 %510 }
 0x543   :  { %v513_v61 = vmul.f32 %v3226_v29, %v511_v60 }
 0x544   :  { %v643_v62 = vpop.permute.xlu0 %642 }
 0x545   :  { %515 = vrot.lane.b32.xlu0 %v513_v61, %s3518_s3  ;;  %v648_v63 = vmul.f32 %v3230_v33, %v643_v62 }
 0x546   :  { %v645_v2 = vpop.permute.xlu1 %644 }
 0x547   :  { %v649_v4 = vmul.f32 %v3228_v32, %v645_v2  ;;  %v724_v7 = vrot.slane %v648_v63, 1  ;;  %v925_v2 = vrot.slane %v3725_v58, 7 }
 0x549   :  { %v725_v9 = vsel %vm407_vm2, %v649_v4, %v724_v7 }
 0x54a   :  { %726 = vrot.lane.b32.xlu1 %v725_v9, %s3518_s3 }
 0x5b7   :  { %v516_v10 = vpop.permute.xlu0 %515 }
 0x5b8   :  { %519 = vst.msk [vmem:[%s4159_s7] sm:$0x3] %vm518_vm4, %v516_v10  ;;  %2975 = vmatmul.mubr.msk.f32.vlgmr.msra.gmra.mxu0 %vm206_vm3, %v516_v10 }
 0x5b9   :  { %2989 = vmatpush3.msra.mxu0 %v3592_v3  ;;  %2996 = vmatprep.mubr.msk.f32.mxu0 %vm3516_vm0, %v3515_v0 }
 0x5ba   :  { %2990 = vmatprep.subr.mxu0 %v3515_v0 }
 0x5bb   :  { %2991 = vmatpush3.msra.mxu0 %v3595_v5 }
 0x5bc   :  { %2992 = vmatprep.subr.mxu0 %v3515_v0  ;;  %v727_v11 = vpop.permute.xlu1 %726 }
 0x5bd   :  { %2993 = vmatpush3.msra.mxu0 %v3598_v6  ;;  %2986 = vmatmul.mubr.msk.f32.vlgmr.msra.gmra.mxu1 %vm206_vm3, %v727_v11 }
 0x5be   :  { %2994 = vmatprep.subr.mxu0 %v3515_v0  ;;  %3000 = vmatpush3.msra.mxu1 %v3635_v45 }
 0x5bf   :  { %2995 = vmatpush3.msra.mxu0 %v3602_v8  ;;  %3001 = vmatprep.subr.mxu1 %v3515_v0 }
 0x5c0   :  { %2997 = vmatmul.mubr.msk.f32.vlgmr.msra.gmra.mxu0 %vm206_vm3, %v727_v11  ;;  %3007 = vmatprep.mubr.msk.f32.mxu1 %vm3516_vm0, %v3515_v0 }
 0x5c1   :  { %3002 = vmatpush3.msra.mxu1 %v3637_v46  ;;  %3010 = vmatprep.subr.mxu0 %v3515_v0 }
 0x5c2   :  { %3003 = vmatprep.subr.mxu1 %v3515_v0  ;;  %3011 = vmatpush3.msra.mxu0 %v3640_v47 }
 0x5c3   :  { %3004 = vmatpush3.msra.mxu1 %v3645_v49  ;;  %3012 = vmatprep.subr.mxu0 %v3515_v0 }
 0x5c4   :  { %3005 = vmatprep.subr.mxu1 %v3515_v0  ;;  %3013 = vmatpush3.msra.mxu0 %v3642_v48 }
 0x5c5   :  { %3006 = vmatpush3.msra.mxu1 %v3651_v50  ;;  %3014 = vmatprep.subr.mxu0 %v3515_v0 }
 0x5c6   :  { %3021 = vmatprep.subr.mxu1 %v3515_v0  ;;  %3015 = vmatpush3.msra.mxu0 %v3654_v51 }
 0x5c7   :  { %3016 = vmatprep.subr.mxu0 %v3515_v0  ;;  %3018 = vmatprep.mubr.msk.f32.mxu0 %vm3516_vm0, %v3515_v0 }
 0x5c8   :  { %3017 = vmatpush3.msra.mxu0 %v3664_v53 }
 0x5c9   :  { %3032 = vmatprep.subr.mxu0 %v3515_v0 }
 0x678   :  { %v718_v12 = vpop.f32.mrf.mxu0 }
 0x67a   :  { %v2976_v13 = vpop.f32.mrf.mxu0 }
 0x67d   :  { %v796_v14 = vpop.f32.mrf.mxu1 }
 0x67e   :  { %v797_v15 = vadd.f32 %v796_v14, %v718_v12 }
 0x67f   :  { %v2987_v17 = vpop.f32.mrf.mxu1 }
 0x680   :  { %v897_v16 = vpop.f32.mrf.mxu0  ;;  %v800_v21 = vadd.f32 %v3707_v1, %v797_v15 }
 0x681   :  { %v902_v18 = vrot.slane %v897_v16, 6  ;;  %v903_v19 = vrot.slane %v897_v16, 7 }
 0x682   :  { %v2998_v23 = vpop.f32.mrf.mxu0  ;;  %3237 = vtanh.f32 %v800_v21  ;;  %v2729_v29 = vmul.f32 -1.442695, %v800_v21 }
 0x683   :  { %v906_v24 = vadd.f32 %v902_v18, %v3621_v22  ;;  %v907_v25 = vadd.f32 %v903_v19, %v3619_v20 }
 0x685   :  { %3239 = vtanh.f32 %v906_v24  ;;  %v2732_v30 = vmul.f32 -1.442695, %v906_v24  ;;  %v2733_v31 = vmul.f32 -1.442695, %v907_v25 }
 0x686   :  { %3241 = vtanh.f32 %v907_v25 }
 0x687   :  { %3243 = vpow2.f32 %v2729_v29 }
 0x688   :  { %3245 = vpow2.f32 %v2732_v30 }
 0x689   :  { %3247 = vpow2.f32 %v2733_v31 }
 0x68f   :  { %v3238_v26 = vpop.eup %3237 }
 0x690   :  { %810 = vrot.lane.b32.xlu0 %v3238_v26, %s3517_s25 }
 0x692   :  { %v3240_v27 = vpop.eup %3239 }
 0x693   :  { %932 = vrot.lane.b32.xlu1 %v3240_v27, %s3517_s25  ;;  %v3242_v28 = vpop.eup %3241 }
 0x694   :  { %934 = vrot.lane.b32.xlu0 %v3242_v28, %s3517_s25  ;;  %v3244_v32 = vpop.eup %3243 }
 0x695   :  { %v3246_v33 = vpop.eup %3245  ;;  %v804_v34 = vadd.f32 1.0, %v3244_v32 }
 0x696   :  { %v914_v35 = vadd.f32 1.0, %v3246_v33  ;;  %v3248_v36 = vpop.eup %3247 }
 0x697   :  { %3249 = vrcp.f32 %v804_v34  ;;  %v915_v37 = vadd.f32 1.0, %v3248_v36 }
 0x698   :  { %3251 = vrcp.f32 %v914_v35 }
 0x699   :  { %3253 = vrcp.f32 %v915_v37 }
 0x6a4   :  { %v3250_v38 = vpop.eup %3249 }
 0x6a5   :  { %v3252_v40 = vpop.eup %3251  ;;  %v808_v44 = vmul.f32 %v3250_v38, %v3720_v43 }
 0x6a6   :  { %v3254_v55 = vpop.eup %3253  ;;  %v928_v61 = vmul.f32 %v3252_v40, %v924_v41 }
 0x6a7   :  { %v929_v7 = vmul.f32 %v3254_v55, %v925_v2 }
 0x702   :  { %v811_v39 = vpop.permute.xlu0 %810 }
 0x703   :  { %v813_v42 = vmul.f32 %v3250_v38, %v811_v39 }
 0x705   :  { %v933_v52 = vpop.permute.xlu1 %932  ;;  %815 = vrot.lane.b32.xlu1 %v813_v42, %s3518_s3 }
 0x706   :  { %v938_v54 = vmul.f32 %v3252_v40, %v933_v52  ;;  %v935_v56 = vpop.permute.xlu0 %934 }
 0x707   :  { %v939_v59 = vmul.f32 %v3254_v55, %v935_v56 }
 0x708   :  { %942 = vrot.lane.b32.xlu0 %v938_v54, %s3518_s3 }
 0x709   :  { %944 = vrot.lane.b32.xlu1 %v939_v59, %s3518_s3 }
 0x777   :  { %v816_v60 = vpop.permute.xlu1 %815 }
 0x778   :  { %v3783_v62 = vadd.f32 %v816_v60, %v808_v44 }
 0x77a   :  { %v943_v63 = vpop.permute.xlu0 %942  ;;  %3255 = vtanh.f32 %v3783_v62 }
 0x77b   :  { %v3786_v4 = vadd.f32 %v943_v63, %v928_v61  ;;  %v945_v9 = vpop.permute.xlu1 %944 }
 0x77c   :  { %v3790_v10 = vadd.f32 %v945_v9, %v929_v7 }
 0x77d   :  { %3257 = vtanh.f32 %v3786_v4 }
 0x77e   :  { %3259 = vtanh.f32 %v3790_v10 }
 0x787   :  { %v3256_v43 = vpop.eup %3255 }
 0x788   :  { %821 = vrot.lane.b32.xlu0 %v3256_v43, %s3517_s25 }
 0x78a   :  { %v3258_v57 = vpop.eup %3257 }
 0x78b   :  { %954 = vrot.lane.b32.xlu1 %v3258_v57, %s3517_s25  ;;  %v3260_v11 = vpop.eup %3259 }
 0x78c   :  { %956 = vrot.lane.b32.xlu0 %v3260_v11, %s3517_s25  ;;  %v1237_v11 = vrot.slane %v3786_v4, 7 }
 0x7fa   :  { %v822_v58 = vpop.permute.xlu0 %821 }
 0x7fb   :  { %v824_v12 = vmul.f32 %v3250_v38, %v822_v58 }
 0x7fd   :  { %v955_v13 = vpop.permute.xlu1 %954  ;;  %826 = vrot.lane.b32.xlu1 %v824_v12, %s3518_s3 }
 0x7fe   :  { %v960_v14 = vmul.f32 %v3252_v40, %v955_v13  ;;  %v957_v15 = vpop.permute.xlu0 %956 }
 0x7ff   :  { %v961_v16 = vmul.f32 %v3254_v55, %v957_v15 }
 0x800   :  { %v1036_v17 = vrot.slane %v960_v14, 2 }
 0x801   :  { %v1037_v18 = vrot.slane %v961_v16, 1  ;;  %v1238_v16 = vrot.slane %v3790_v10, 7 }
 0x803   :  { %v1038_v19 = vsel %vm407_vm2, %v1037_v18, %v1036_v17 }
 0x804   :  { %1039 = vrot.lane.b32.xlu0 %v1038_v19, %s3518_s3 }
 0x86f   :  { %v827_v21 = vpop.permute.xlu1 %826 }
 0x870   :  { %2730 = vst.msk [vmem:[%s4159_s7 + $0x2] sm:$0x3] %vm518_vm4, %v827_v21  ;;  %3008 = vmatmul.mubr.msk.f32.vlgmr.msra.gmra.mxu1 %vm206_vm3, %v827_v21 }
 0x871   :  { %3022 = vmatpush3.msra.mxu1 %v3592_v3  ;;  %3029 = vmatprep.mubr.msk.f32.mxu1 %vm3516_vm0, %v3515_v0 }
 0x872   :  { %3023 = vmatprep.subr.mxu1 %v3515_v0 }
 0x873   :  { %3024 = vmatpush3.msra.mxu1 %v3595_v5 }
 0x874   :  { %3025 = vmatprep.subr.mxu1 %v3515_v0 }
 0x875   :  { %3026 = vmatpush3.msra.mxu1 %v3598_v6 }
 0x876   :  { %3027 = vmatprep.subr.mxu1 %v3515_v0  ;;  %v1040_v23 = vpop.permute.xlu0 %1039 }
 0x877   :  { %3028 = vmatpush3.msra.mxu1 %v3602_v8  ;;  %3019 = vmatmul.mubr.msk.f32.vlgmr.msra.gmra.mxu0 %vm206_vm3, %v1040_v23 }
 0x878   :  { %3030 = vmatmul.mubr.msk.f32.vlgmr.msra.gmra.mxu1 %vm206_vm3, %v1040_v23  ;;  %3033 = vmatpush3.msra.mxu0 %v3635_v45 }
 0x879   :  { %3040 = vmatprep.mubr.msk.f32.mxu0 %vm3516_vm0, %v3515_v0  ;;  %3034 = vmatprep.subr.mxu0 %v3515_v0 }
 0x87a   :  { %3043 = vmatprep.subr.mxu1 %v3515_v0  ;;  %3035 = vmatpush3.msra.mxu0 %v3637_v46 }
 0x87b   :  { %3044 = vmatpush3.msra.mxu1 %v3640_v47  ;;  %3036 = vmatprep.subr.mxu0 %v3515_v0 }
 0x87c   :  { %3045 = vmatprep.subr.mxu1 %v3515_v0  ;;  %3037 = vmatpush3.msra.mxu0 %v3645_v49 }
 0x87d   :  { %3046 = vmatpush3.msra.mxu1 %v3642_v48  ;;  %3038 = vmatprep.subr.mxu0 %v3515_v0 }
 0x87e   :  { %3047 = vmatprep.subr.mxu1 %v3515_v0  ;;  %3039 = vmatpush3.msra.mxu0 %v3651_v50 }
 0x87f   :  { %3048 = vmatpush3.msra.mxu1 %v3654_v51  ;;  %3054 = vmatprep.subr.mxu0 %v3515_v0 }
 0x880   :  { %3049 = vmatprep.subr.mxu1 %v3515_v0  ;;  %3051 = vmatprep.mubr.msk.f32.mxu1 %vm3516_vm0, %v3515_v0 }
 0x881   :  { %3050 = vmatpush3.msra.mxu1 %v3664_v53 }
 0x882   :  { %3065 = vmatprep.subr.mxu1 %v3515_v0 }
 0x930   :  { %v1030_v24 = vpop.f32.mrf.mxu1 }
 0x932   :  { %v3009_v25 = vpop.f32.mrf.mxu1 }
 0x937   :  { %v1109_v26 = vpop.f32.mrf.mxu0 }
 0x938   :  { %v1210_v27 = vpop.f32.mrf.mxu1  ;;  %v1110_v28 = vadd.f32 %v1109_v26, %v1030_v24 }
 0x939   :  { %v1215_v29 = vrot.slane %v1210_v27, 5  ;;  %v1216_v30 = vrot.slane %v1210_v27, 6  ;;  %v3020_v31 = vpop.f32.mrf.mxu0 }
 0x93a   :  { %v3031_v32 = vpop.f32.mrf.mxu1  ;;  %v1113_v33 = vadd.f32 %v3707_v1, %v1110_v28 }
 0x93b   :  { %v1219_v34 = vadd.f32 %v1215_v29, %v3621_v22  ;;  %v1220_v35 = vadd.f32 %v1216_v30, %v3619_v20 }
 0x93c   :  { %3261 = vtanh.f32 %v1113_v33  ;;  %v2736_v39 = vmul.f32 -1.442695, %v1113_v33 }
 0x93d   :  { %3263 = vtanh.f32 %v1219_v34  ;;  %v2739_v40 = vmul.f32 -1.442695, %v1219_v34  ;;  %v2740_v42 = vmul.f32 -1.442695, %v1220_v35 }
 0x93e   :  { %3265 = vtanh.f32 %v1220_v35 }
 0x93f   :  { %3267 = vpow2.f32 %v2736_v39 }
 0x940   :  { %3269 = vpow2.f32 %v2739_v40 }
 0x941   :  { %3271 = vpow2.f32 %v2740_v42 }
 0x949   :  { %v3262_v36 = vpop.eup %3261 }
 0x94a   :  { %v3264_v37 = vpop.eup %3263  ;;  %1123 = vrot.lane.b32.xlu1 %v3262_v36, %s3517_s25 }
 0x94b   :  { %1245 = vrot.lane.b32.xlu0 %v3264_v37, %s3517_s25  ;;  %v3266_v38 = vpop.eup %3265 }
 0x94c   :  { %v3268_v52 = vpop.eup %3267 }
 0x94d   :  { %v3270_v54 = vpop.eup %3269  ;;  %v1117_v55 = vadd.f32 1.0, %v3268_v52 }
 0x94e   :  { %1247 = vrot.lane.b32.xlu1 %v3266_v38, %s3517_s25  ;;  %v1227_v56 = vadd.f32 1.0, %v3270_v54  ;;  %v3272_v59 = vpop.eup %3271 }
 0x94f   :  { %3273 = vrcp.f32 %v1117_v55  ;;  %v1228_v41 = vadd.f32 1.0, %v3272_v59 }
 0x950   :  { %3275 = vrcp.f32 %v1227_v56 }
 0x951   :  { %3277 = vrcp.f32 %v1228_v41 }
 0x95c   :  { %v3274_v44 = vpop.eup %3273 }
 0x95d   :  { %v3276_v61 = vpop.eup %3275  ;;  %v1121_v58 = vmul.f32 %v3274_v44, %v3783_v62 }
 0x95e   :  { %v3278_v9 = vpop.eup %3277  ;;  %v1241_v12 = vmul.f32 %v3276_v61, %v1237_v11 }
 0x95f   :  { %v1242_v18 = vmul.f32 %v3278_v9, %v1238_v16 }
 0x9bc   :  { %v1124_v60 = vpop.permute.xlu1 %1123 }
 0x9bd   :  { %v1246_v63 = vpop.permute.xlu0 %1245  ;;  %v1126_v2 = vmul.f32 %v3274_v44, %v1124_v60 }
 0x9be   :  { %v1251_v7 = vmul.f32 %v3276_v61, %v1246_v63 }
 0x9bf   :  { %1128 = vrot.lane.b32.xlu0 %v1126_v2, %s3518_s3 }
 0x9c0   :  { %1255 = vrot.lane.b32.xlu1 %v1251_v7, %s3518_s3  ;;  %v1248_v43 = vpop.permute.xlu1 %1247 }
 0x9c1   :  { %v1252_v57 = vmul.f32 %v3278_v9, %v1248_v43 }
 0x9c3   :  { %1257 = vrot.lane.b32.xlu0 %v1252_v57, %s3518_s3 }
 0xa31   :  { %v1129_v13 = vpop.permute.xlu0 %1128 }
 0xa32   :  { %v1256_v14 = vpop.permute.xlu1 %1255  ;;  %v3847_v15 = vadd.f32 %v1129_v13, %v1121_v58 }
 0xa33   :  { %v3850_v17 = vadd.f32 %v1256_v14, %v1241_v12 }
 0xa34   :  { %3279 = vtanh.f32 %v3847_v15 }
 0xa35   :  { %3281 = vtanh.f32 %v3850_v17  ;;  %v1258_v19 = vpop.permute.xlu0 %1257 }
 0xa36   :  { %v3854_v21 = vadd.f32 %v1258_v19, %v1242_v18  ;;  %v1550_v18 = vrot.slane %v3850_v17, 7 }
 0xa38   :  { %3283 = vtanh.f32 %v3854_v21 }
 0xa41   :  { %v3280_v62 = vpop.eup %3279 }
 0xa42   :  { %v3282_v4 = vpop.eup %3281  ;;  %1134 = vrot.lane.b32.xlu1 %v3280_v62, %s3517_s25 }
 0xa43   :  { %1267 = vrot.lane.b32.xlu0 %v3282_v4, %s3517_s25 }
 0xa45   :  { %v3284_v23 = vpop.eup %3283 }
 0xa46   :  { %1269 = vrot.lane.b32.xlu1 %v3284_v23, %s3517_s25 }
 0xab4   :  { %v1135_v10 = vpop.permute.xlu1 %1134 }
 0xab5   :  { %v1268_v24 = vpop.permute.xlu0 %1267  ;;  %v1137_v25 = vmul.f32 %v3274_v44, %v1135_v10 }
 0xab6   :  { %v1273_v26 = vmul.f32 %v3276_v61, %v1268_v24  ;;  %v1551_v24 = vrot.slane %v3854_v21, 7 }
 0xab7   :  { %1139 = vrot.lane.b32.xlu0 %v1137_v25, %s3518_s3 }
 0xab8   :  { %v1270_v27 = vpop.permute.xlu1 %1269  ;;  %v1349_v29 = vrot.slane %v1273_v26, 3 }
 0xab9   :  { %v1274_v28 = vmul.f32 %v3278_v9, %v1270_v27 }
 0xabb   :  { %v1350_v30 = vrot.slane %v1274_v28, 2 }
 0xabd   :  { %v1351_v31 = vsel %vm407_vm2, %v1350_v30, %v1349_v29 }
 0xabe   :  { %1352 = vrot.lane.b32.xlu1 %v1351_v31, %s3518_s3 }
 0xb29   :  { %v1140_v32 = vpop.permute.xlu0 %1139 }
 0xb2a   :  { %2737 = vst.msk [vmem:[%s4159_s7 + $0x4] sm:$0x3] %vm518_vm4, %v1140_v32  ;;  %3041 = vmatmul.mubr.msk.f32.vlgmr.msra.gmra.mxu0 %vm206_vm3, %v1140_v32 }
 0xb2b   :  { %3055 = vmatpush3.msra.mxu0 %v3592_v3  ;;  %3062 = vmatprep.mubr.msk.f32.mxu0 %vm3516_vm0, %v3515_v0 }
 0xb2c   :  { %3056 = vmatprep.subr.mxu0 %v3515_v0 }
 0xb2d   :  { %3057 = vmatpush3.msra.mxu0 %v3595_v5 }
 0xb2e   :  { %3058 = vmatprep.subr.mxu0 %v3515_v0 }
 0xb2f   :  { %3059 = vmatpush3.msra.mxu0 %v3598_v6 }
 0xb30   :  { %3060 = vmatprep.subr.mxu0 %v3515_v0  ;;  %v1353_v33 = vpop.permute.xlu1 %1352 }
 0xb31   :  { %3061 = vmatpush3.msra.mxu0 %v3602_v8  ;;  %3052 = vmatmul.mubr.msk.f32.vlgmr.msra.gmra.mxu1 %vm206_vm3, %v1353_v33 }
 0xb32   :  { %3063 = vmatmul.mubr.msk.f32.vlgmr.msra.gmra.mxu0 %vm206_vm3, %v1353_v33  ;;  %3066 = vmatpush3.msra.mxu1 %v3635_v45 }
 0xb33   :  { %3073 = vmatprep.mubr.msk.f32.mxu1 %vm3516_vm0, %v3515_v0  ;;  %3067 = vmatprep.subr.mxu1 %v3515_v0 }
 0xb34   :  { %3076 = vmatprep.subr.mxu0 %v3515_v0  ;;  %3068 = vmatpush3.msra.mxu1 %v3637_v46 }
 0xb35   :  { %3077 = vmatpush3.msra.mxu0 %v3640_v47  ;;  %3069 = vmatprep.subr.mxu1 %v3515_v0 }
 0xb36   :  { %3078 = vmatprep.subr.mxu0 %v3515_v0  ;;  %3070 = vmatpush3.msra.mxu1 %v3645_v49 }
 0xb37   :  { %3079 = vmatpush3.msra.mxu0 %v3642_v48  ;;  %3071 = vmatprep.subr.mxu1 %v3515_v0 }
 0xb38   :  { %3080 = vmatprep.subr.mxu0 %v3515_v0  ;;  %3072 = vmatpush3.msra.mxu1 %v3651_v50 }
 0xb39   :  { %3081 = vmatpush3.msra.mxu0 %v3654_v51  ;;  %3087 = vmatprep.subr.mxu1 %v3515_v0 }
 0xb3a   :  { %3082 = vmatprep.subr.mxu0 %v3515_v0  ;;  %3084 = vmatprep.mubr.msk.f32.mxu0 %vm3516_vm0, %v3515_v0 }
 0xb3b   :  { %3083 = vmatpush3.msra.mxu0 %v3664_v53 }
 0xb3c   :  { %3098 = vmatprep.subr.mxu0 %v3515_v0 }
 0xbea   :  { %v1343_v3 = vpop.f32.mrf.mxu0 }
 0xbec   :  { %v3042_v5 = vpop.f32.mrf.mxu0 }
 0xbf1   :  { %v1422_v6 = vpop.f32.mrf.mxu1 }
 0xbf2   :  { %v1523_v8 = vpop.f32.mrf.mxu0  ;;  %v1423_v34 = vadd.f32 %v1422_v6, %v1343_v3 }
 0xbf3   :  { %v1528_v35 = vrot.slane %v1523_v8, 4  ;;  %v1529_v36 = vrot.slane %v1523_v8, 5  ;;  %v3053_v37 = vpop.f32.mrf.mxu1 }
 0xbf4   :  { %v3064_v38 = vpop.f32.mrf.mxu0  ;;  %v1426_v39 = vadd.f32 %v3707_v1, %v1423_v34  ;;  %v3942_v37 = vld [vmem:[#allocation6 + $0x8] sm:$0xff] }
 0xbf5   :  { %v1532_v40 = vadd.f32 %v1528_v35, %v3621_v22  ;;  %v1533_v42 = vadd.f32 %v1529_v36, %v3619_v20  ;;  %v3932_v35 = vld [vmem:[#allocation6 + $0x18] sm:$0xff]  ;;  %v3938_v36 = vld [vmem:[#allocation6 + $0x10] sm:$0xff] }
 0xbf6   :  { %3285 = vtanh.f32 %v1426_v39  ;;  %v2743_v56 = vmul.f32 -1.442695, %v1426_v39  ;;  %v3946_v39 = vld [vmem:[#allocation6] sm:$0xff] }
 0xbf7   :  { %3287 = vtanh.f32 %v1532_v40  ;;  %v2746_v59 = vmul.f32 -1.442695, %v1532_v40  ;;  %v2747_v41 = vmul.f32 -1.442695, %v1533_v42 }
 0xbf8   :  { %3289 = vtanh.f32 %v1533_v42 }
 0xbf9   :  { %3291 = vpow2.f32 %v2743_v56 }
 0xbfa   :  { %3293 = vpow2.f32 %v2746_v59 }
 0xbfb   :  { %3295 = vpow2.f32 %v2747_v41 }
 0xc03   :  { %v3286_v52 = vpop.eup %3285 }
 0xc04   :  { %v3288_v54 = vpop.eup %3287  ;;  %1436 = vrot.lane.b32.xlu0 %v3286_v52, %s3517_s25 }
 0xc05   :  { %1558 = vrot.lane.b32.xlu1 %v3288_v54, %s3517_s25  ;;  %v3290_v55 = vpop.eup %3289 }
 0xc06   :  { %v3292_v44 = vpop.eup %3291 }
 0xc07   :  { %v3294_v60 = vpop.eup %3293  ;;  %v1430_v61 = vadd.f32 1.0, %v3292_v44 }
 0xc08   :  { %1560 = vrot.lane.b32.xlu0 %v3290_v55, %s3517_s25  ;;  %v1540_v63 = vadd.f32 1.0, %v3294_v60  ;;  %v3296_v2 = vpop.eup %3295 }
 0xc09   :  { %3297 = vrcp.f32 %v1430_v61  ;;  %v1541_v7 = vadd.f32 1.0, %v3296_v2 }
 0xc0a   :  { %3299 = vrcp.f32 %v1540_v63 }
 0xc0b   :  { %3301 = vrcp.f32 %v1541_v7 }
 0xc16   :  { %v3298_v9 = vpop.eup %3297 }
 0xc17   :  { %v3300_v57 = vpop.eup %3299  ;;  %v1434_v19 = vmul.f32 %v3298_v9, %v3847_v15 }
 0xc18   :  { %v3302_v13 = vpop.eup %3301  ;;  %v1554_v4 = vmul.f32 %v3300_v57, %v1550_v18 }
 0xc19   :  { %v1555_v26 = vmul.f32 %v3302_v13, %v1551_v24 }
 0xc76   :  { %v1437_v43 = vpop.permute.xlu0 %1436 }
 0xc77   :  { %v1439_v11 = vmul.f32 %v3298_v9, %v1437_v43  ;;  %v1559_v58 = vpop.permute.xlu1 %1558 }
 0xc78   :  { %v1564_v12 = vmul.f32 %v3300_v57, %v1559_v58 }
 0xc79   :  { %1441 = vrot.lane.b32.xlu1 %v1439_v11, %s3518_s3 }
 0xc7a   :  { %1568 = vrot.lane.b32.xlu0 %v1564_v12, %s3518_s3  ;;  %v1561_v14 = vpop.permute.xlu0 %1560 }
 0xc7b   :  { %v1565_v16 = vmul.f32 %v3302_v13, %v1561_v14 }
 0xc7d   :  { %1570 = vrot.lane.b32.xlu1 %v1565_v16, %s3518_s3 }
 0xceb   :  { %v1442_v62 = vpop.permute.xlu1 %1441 }
 0xcec   :  { %v3911_v23 = vadd.f32 %v1442_v62, %v1434_v19  ;;  %v1569_v10 = vpop.permute.xlu0 %1568 }
 0xced   :  { %v3914_v25 = vadd.f32 %v1569_v10, %v1554_v4 }
 0xcee   :  { %3303 = vtanh.f32 %v3911_v23 }
 0xcef   :  { %3305 = vtanh.f32 %v3914_v25  ;;  %v1571_v27 = vpop.permute.xlu1 %1570  ;;  %v1863_v19 = vrot.slane %v3914_v25, 7 }
 0xcf0   :  { %v3918_v28 = vadd.f32 %v1571_v27, %v1555_v26 }
 0xcf2   :  { %3307 = vtanh.f32 %v3918_v28  ;;  %v1864_v27 = vrot.slane %v3918_v28, 7 }
 0xcfb   :  { %v3304_v15 = vpop.eup %3303 }
 0xcfc   :  { %v3306_v17 = vpop.eup %3305  ;;  %1447 = vrot.lane.b32.xlu0 %v3304_v15, %s3517_s25 }
 0xcfd   :  { %1580 = vrot.lane.b32.xlu1 %v3306_v17, %s3517_s25 }
 0xcff   :  { %v3308_v29 = vpop.eup %3307 }
 0xd00   :  { %1582 = vrot.lane.b32.xlu0 %v3308_v29, %s3517_s25 }
 0xd6e   :  { %v1448_v21 = vpop.permute.xlu0 %1447 }
 0xd6f   :  { %v1450_v30 = vmul.f32 %v3298_v9, %v1448_v21  ;;  %v1581_v31 = vpop.permute.xlu1 %1580 }
 0xd70   :  { %v1586_v32 = vmul.f32 %v3300_v57, %v1581_v31 }
 0xd71   :  { %1452 = vrot.lane.b32.xlu1 %v1450_v30, %s3518_s3 }
 0xd72   :  { %v1583_v33 = vpop.permute.xlu0 %1582  ;;  %v1662_v5 = vrot.slane %v1586_v32, 4 }
 0xd73   :  { %v1587_v3 = vmul.f32 %v3302_v13, %v1583_v33 }
 0xd75   :  { %v1663_v6 = vrot.slane %v1587_v3, 3 }
 0xd77   :  { %v1664_v8 = vsel %vm407_vm2, %v1663_v6, %v1662_v5 }
 0xd78   :  { %1665 = vrot.lane.b32.xlu0 %v1664_v8, %s3518_s3 }
 0xde3   :  { %v1453_v34 = vpop.permute.xlu1 %1452 }
 0xde4   :  { %2744 = vst.msk [vmem:[%s4159_s7 + $0x6] sm:$0x3] %vm518_vm4, %v1453_v34  ;;  %3074 = vmatmul.mubr.msk.f32.vlgmr.msra.gmra.mxu1 %vm206_vm3, %v1453_v34 }
 0xde5   :  { %3088 = vmatpush3.msra.mxu1 %v3932_v35  ;;  %3095 = vmatprep.mubr.msk.f32.mxu1 %vm3516_vm0, %v3515_v0 }
 0xde6   :  { %3089 = vmatprep.subr.mxu1 %v3515_v0 }
 0xde7   :  { %3090 = vmatpush3.msra.mxu1 %v3938_v36 }
 0xde8   :  { %3091 = vmatprep.subr.mxu1 %v3515_v0 }
 0xde9   :  { %3092 = vmatpush3.msra.mxu1 %v3942_v37 }
 0xdea   :  { %3093 = vmatprep.subr.mxu1 %v3515_v0  ;;  %v1666_v38 = vpop.permute.xlu0 %1665 }
 0xdeb   :  { %3094 = vmatpush3.msra.mxu1 %v3946_v39  ;;  %3085 = vmatmul.mubr.msk.f32.vlgmr.msra.gmra.mxu0 %vm206_vm3, %v1666_v38 }
 0xdec   :  { %3096 = vmatmul.mubr.msk.f32.vlgmr.msra.gmra.mxu1 %vm206_vm3, %v1666_v38  ;;  %3099 = vmatpush3.msra.mxu0 %v3635_v45 }
 0xded   :  { %3106 = vmatprep.mubr.msk.f32.mxu0 %vm3516_vm0, %v3515_v0  ;;  %3100 = vmatprep.subr.mxu0 %v3515_v0 }
 0xdee   :  { %3109 = vmatprep.subr.mxu1 %v3515_v0  ;;  %3101 = vmatpush3.msra.mxu0 %v3637_v46 }
 0xdef   :  { %3110 = vmatpush3.msra.mxu1 %v3640_v47  ;;  %3102 = vmatprep.subr.mxu0 %v3515_v0 }
 0xdf0   :  { %3111 = vmatprep.subr.mxu1 %v3515_v0  ;;  %3103 = vmatpush3.msra.mxu0 %v3645_v49 }
 0xdf1   :  { %3112 = vmatpush3.msra.mxu1 %v3642_v48  ;;  %3104 = vmatprep.subr.mxu0 %v3515_v0 }
 0xdf2   :  { %3113 = vmatprep.subr.mxu1 %v3515_v0  ;;  %3105 = vmatpush3.msra.mxu0 %v3651_v50 }
 0xdf3   :  { %3114 = vmatpush3.msra.mxu1 %v3654_v51  ;;  %3120 = vmatprep.subr.mxu0 %v3515_v0 }
 0xdf4   :  { %3115 = vmatprep.subr.mxu1 %v3515_v0  ;;  %3117 = vmatprep.mubr.msk.f32.mxu1 %vm3516_vm0, %v3515_v0 }
 0xdf5   :  { %3116 = vmatpush3.msra.mxu1 %v3664_v53 }
 0xdf6   :  { %3131 = vmatprep.subr.mxu1 %v3515_v0 }
 0xea4   :  { %v1656_v45 = vpop.f32.mrf.mxu1 }
 0xea6   :  { %v3075_v46 = vpop.f32.mrf.mxu1 }
 0xea7   :  { %v4015_v46 = vld [vmem:[#allocation9 + $0x18] sm:$0xff] }
 0xeab   :  { %v1735_v47 = vpop.f32.mrf.mxu0 }
 0xeac   :  { %v1836_v48 = vpop.f32.mrf.mxu1  ;;  %v1736_v49 = vadd.f32 %v1735_v47, %v1656_v45  ;;  %v4022_v47 = vld [vmem:[#allocation9 + $0x10] sm:$0xff] }
 0xead   :  { %v1841_v40 = vrot.slane %v1836_v48, 3  ;;  %v1842_v50 = vrot.slane %v1836_v48, 4  ;;  %v3086_v42 = vpop.f32.mrf.mxu0  ;;  %v4025_v48 = vld [vmem:[#allocation7 + $0x18] sm:$0xff] }
 0xeae   :  { %v3097_v51 = vpop.f32.mrf.mxu1  ;;  %v1739_v52 = vadd.f32 %v3707_v1, %v1736_v49  ;;  %v4030_v49 = vld [vmem:[#allocation9 + $0x8] sm:$0xff] }
 0xeaf   :  { %v1845_v54 = vadd.f32 %v1841_v40, %v3621_v22  ;;  %v1846_v53 = vadd.f32 %v1842_v50, %v3619_v20  ;;  %v4033_v40 = vld [vmem:[#allocation7 + $0x10] sm:$0xff]  ;;  %v4038_v50 = vld [vmem:[#allocation9] sm:$0xff]  ;;  %v4041_v42 = vld [vmem:[#allocation7 + $0x8] sm:$0xff] }
 0xeb0   :  { %3309 = vtanh.f32 %v1739_v52  ;;  %v2750_v41 = vmul.f32 -1.442695, %v1739_v52  ;;  %v4046_v51 = vld [vmem:[#allocation7] sm:$0xff] }
 0xeb1   :  { %3311 = vtanh.f32 %v1845_v54  ;;  %v2753_v44 = vmul.f32 -1.442695, %v1845_v54  ;;  %v2754_v1 = vmul.f32 -1.442695, %v1846_v53 }
 0xeb2   :  { %3313 = vtanh.f32 %v1846_v53 }
 0xeb3   :  { %3315 = vpow2.f32 %v2750_v41 }
 0xeb4   :  { %3317 = vpow2.f32 %v2753_v44 }
 0xeb5   :  { %3319 = vpow2.f32 %v2754_v1 }
 0xebd   :  { %v3310_v55 = vpop.eup %3309 }
 0xebe   :  { %v3312_v56 = vpop.eup %3311  ;;  %1749 = vrot.lane.b32.xlu1 %v3310_v55, %s3517_s25 }
 0xebf   :  { %1871 = vrot.lane.b32.xlu0 %v3312_v56, %s3517_s25  ;;  %v3314_v59 = vpop.eup %3313 }
 0xec0   :  { %v3316_v60 = vpop.eup %3315 }
 0xec1   :  { %v3318_v61 = vpop.eup %3317  ;;  %v1743_v63 = vadd.f32 1.0, %v3316_v60  ;;  %v4055_v60 = vld [vmem:[%s4158_s6] ss:$0 sm:$0xff] }
 0xec2   :  { %1873 = vrot.lane.b32.xlu1 %v3314_v59, %s3517_s25  ;;  %v1853_v2 = vadd.f32 1.0, %v3318_v61  ;;  %v3320_v7 = vpop.eup %3319 }
 0xec3   :  { %3321 = vrcp.f32 %v1743_v63  ;;  %v1854_v9 = vadd.f32 1.0, %v3320_v7 }
 0xec4   :  { %3323 = vrcp.f32 %v1853_v2 }
 0xec5   :  { %3325 = vrcp.f32 %v1854_v9 }
 0xed0   :  { %v3322_v43 = vpop.eup %3321 }
 0xed1   :  { %v3324_v11 = vpop.eup %3323  ;;  %v1747_v62 = vmul.f32 %v3322_v43, %v3911_v23 }
 0xed2   :  { %v3326_v14 = vpop.eup %3325  ;;  %v1867_v4 = vmul.f32 %v3324_v11, %v1863_v19 }
 0xed3   :  { %v1868_v17 = vmul.f32 %v3326_v14, %v1864_v27 }
 0xf30   :  { %v1750_v57 = vpop.permute.xlu1 %1749 }
 0xf31   :  { %v1872_v58 = vpop.permute.xlu0 %1871  ;;  %v1752_v12 = vmul.f32 %v3322_v43, %v1750_v57 }
 0xf32   :  { %v1877_v13 = vmul.f32 %v3324_v11, %v1872_v58 }
 0xf33   :  { %1754 = vrot.lane.b32.xlu0 %v1752_v12, %s3518_s3 }
 0xf34   :  { %1881 = vrot.lane.b32.xlu1 %v1877_v13, %s3518_s3  ;;  %v1874_v16 = vpop.permute.xlu1 %1873 }
 0xf35   :  { %v1878_v18 = vmul.f32 %v3326_v14, %v1874_v16 }
 0xf37   :  { %1883 = vrot.lane.b32.xlu0 %v1878_v18, %s3518_s3 }
 0xfa5   :  { %v1755_v10 = vpop.permute.xlu0 %1754 }
 0xfa6   :  { %v1882_v24 = vpop.permute.xlu1 %1881  ;;  %v3983_v26 = vadd.f32 %v1755_v10, %v1747_v62 }
 0xfa7   :  { %v3986_v15 = vadd.f32 %v1882_v24, %v1867_v4 }
 0xfa8   :  { %3327 = vtanh.f32 %v3983_v26 }
 0xfa9   :  { %3329 = vtanh.f32 %v3986_v15  ;;  %v1884_v29 = vpop.permute.xlu0 %1883 }
 0xfaa   :  { %v3990_v21 = vadd.f32 %v1884_v29, %v1868_v17 }
 0xfac   :  { %3331 = vtanh.f32 %v3990_v21 }
 0xfb5   :  { %v3328_v23 = vpop.eup %3327 }
 0xfb6   :  { %v3330_v25 = vpop.eup %3329  ;;  %1760 = vrot.lane.b32.xlu1 %v3328_v23, %s3517_s25 }
 0xfb7   :  { %1893 = vrot.lane.b32.xlu0 %v3330_v25, %s3517_s25 }
 0xfb9   :  { %v3332_v30 = vpop.eup %3331 }
 0xfba   :  { %1895 = vrot.lane.b32.xlu1 %v3332_v30, %s3517_s25  ;;  %v2176_v30 = vrot.slane %v3986_v15, 7 }
0x1028   :  { %v1761_v28 = vpop.permute.xlu1 %1760 }
0x1029   :  { %v1894_v31 = vpop.permute.xlu0 %1893  ;;  %v1763_v32 = vmul.f32 %v3322_v43, %v1761_v28 }
0x102a   :  { %v1899_v33 = vmul.f32 %v3324_v11, %v1894_v31 }
0x102b   :  { %1765 = vrot.lane.b32.xlu0 %v1763_v32, %s3518_s3 }
0x102c   :  { %v1896_v3 = vpop.permute.xlu1 %1895  ;;  %v1975_v6 = vrot.slane %v1899_v33, 5 }
0x102d   :  { %v1900_v5 = vmul.f32 %v3326_v14, %v1896_v3 }
0x102f   :  { %v1976_v8 = vrot.slane %v1900_v5, 4  ;;  %v2177_v5 = vrot.slane %v3990_v21, 7 }
0x1031   :  { %v1977_v34 = vsel %vm407_vm2, %v1976_v8, %v1975_v6 }
0x1032   :  { %1978 = vrot.lane.b32.xlu1 %v1977_v34, %s3518_s3 }
0x109d   :  { %v1766_v38 = vpop.permute.xlu0 %1765 }
0x109e   :  { %2751 = vst.msk [vmem:[%s4159_s7 + $0x8] sm:$0x3] %vm518_vm4, %v1766_v38  ;;  %3107 = vmatmul.mubr.msk.f32.vlgmr.msra.gmra.mxu0 %vm206_vm3, %v1766_v38 }
0x109f   :  { %3121 = vmatpush3.msra.mxu0 %v3932_v35  ;;  %3128 = vmatprep.mubr.msk.f32.mxu0 %vm3516_vm0, %v3515_v0 }
0x10a0   :  { %3122 = vmatprep.subr.mxu0 %v3515_v0 }
0x10a1   :  { %3123 = vmatpush3.msra.mxu0 %v3938_v36 }
0x10a2   :  { %3124 = vmatprep.subr.mxu0 %v3515_v0 }
0x10a3   :  { %3125 = vmatpush3.msra.mxu0 %v3942_v37 }
0x10a4   :  { %3126 = vmatprep.subr.mxu0 %v3515_v0  ;;  %v1979_v45 = vpop.permute.xlu1 %1978 }
0x10a5   :  { %3127 = vmatpush3.msra.mxu0 %v3946_v39  ;;  %3118 = vmatmul.mubr.msk.f32.vlgmr.msra.gmra.mxu1 %vm206_vm3, %v1979_v45 }
0x10a6   :  { %3129 = vmatmul.mubr.msk.f32.vlgmr.msra.gmra.mxu0 %vm206_vm3, %v1979_v45  ;;  %3132 = vmatpush3.msra.mxu1 %v4015_v46 }
0x10a7   :  { %3139 = vmatprep.mubr.msk.f32.mxu1 %vm3516_vm0, %v3515_v0  ;;  %3133 = vmatprep.subr.mxu1 %v3515_v0 }
0x10a8   :  { %3142 = vmatprep.subr.mxu0 %v3515_v0  ;;  %3134 = vmatpush3.msra.mxu1 %v4022_v47 }
0x10a9   :  { %3143 = vmatpush3.msra.mxu0 %v4025_v48  ;;  %3135 = vmatprep.subr.mxu1 %v3515_v0 }
0x10aa   :  { %3144 = vmatprep.subr.mxu0 %v3515_v0  ;;  %3136 = vmatpush3.msra.mxu1 %v4030_v49 }
0x10ab   :  { %3145 = vmatpush3.msra.mxu0 %v4033_v40  ;;  %3137 = vmatprep.subr.mxu1 %v3515_v0 }
0x10ac   :  { %3146 = vmatprep.subr.mxu0 %v3515_v0  ;;  %3138 = vmatpush3.msra.mxu1 %v4038_v50 }
0x10ad   :  { %3147 = vmatpush3.msra.mxu0 %v4041_v42  ;;  %3153 = vmatprep.subr.mxu1 %v3515_v0 }
0x10ae   :  { %3148 = vmatprep.subr.mxu0 %v3515_v0  ;;  %3150 = vmatprep.mubr.msk.f32.mxu0 %vm3516_vm0, %v3515_v0 }
0x10af   :  { %3149 = vmatpush3.msra.mxu0 %v4046_v51 }
0x10b0   :  { %3164 = vmatprep.subr.mxu0 %v3515_v0 }
0x115e   :  { %v1969_v52 = vpop.f32.mrf.mxu0 }
0x1160   :  { %v3108_v54 = vpop.f32.mrf.mxu0 }
0x1165   :  { %v2048_v53 = vpop.f32.mrf.mxu1 }
0x1166   :  { %v2149_v55 = vpop.f32.mrf.mxu0  ;;  %v2049_v56 = vadd.f32 %v2048_v53, %v1969_v52 }
0x1167   :  { %v2154_v59 = vrot.slane %v2149_v55, 2  ;;  %v2155_v41 = vrot.slane %v2149_v55, 3  ;;  %v3119_v44 = vpop.f32.mrf.mxu1 }
0x1168   :  { %v3130_v1 = vpop.f32.mrf.mxu0  ;;  %v2052_v61 = vadd.f32 %v4055_v60, %v2049_v56 }
0x1169   :  { %v2158_v63 = vadd.f32 %v2154_v59, %v3621_v22  ;;  %v2159_v2 = vadd.f32 %v2155_v41, %v3619_v20 }
0x116a   :  { %3333 = vtanh.f32 %v2052_v61  ;;  %v2757_v57 = vmul.f32 -1.442695, %v2052_v61 }
0x116b   :  { %3335 = vtanh.f32 %v2158_v63  ;;  %v2760_v11 = vmul.f32 -1.442695, %v2158_v63  ;;  %v2761_v58 = vmul.f32 -1.442695, %v2159_v2 }
0x116c   :  { %3337 = vtanh.f32 %v2159_v2 }
0x116d   :  { %3339 = vpow2.f32 %v2757_v57 }
0x116e   :  { %3341 = vpow2.f32 %v2760_v11 }
0x116f   :  { %3343 = vpow2.f32 %v2761_v58 }
0x1177   :  { %v3334_v7 = vpop.eup %3333 }
0x1178   :  { %v3336_v9 = vpop.eup %3335  ;;  %2062 = vrot.lane.b32.xlu0 %v3334_v7, %s3517_s25 }
0x1179   :  { %2184 = vrot.lane.b32.xlu1 %v3336_v9, %s3517_s25  ;;  %v3338_v43 = vpop.eup %3337 }
0x117a   :  { %v3340_v12 = vpop.eup %3339 }
0x117b   :  { %v3342_v13 = vpop.eup %3341  ;;  %v2056_v14 = vadd.f32 1.0, %v3340_v12 }
0x117c   :  { %2186 = vrot.lane.b32.xlu0 %v3338_v43, %s3517_s25  ;;  %v2166_v16 = vadd.f32 1.0, %v3342_v13  ;;  %v3344_v18 = vpop.eup %3343 }
0x117d   :  { %3345 = vrcp.f32 %v2056_v14  ;;  %v2167_v19 = vadd.f32 1.0, %v3344_v18 }
0x117e   :  { %3347 = vrcp.f32 %v2166_v16 }
0x117f   :  { %3349 = vrcp.f32 %v2167_v19 }
0x118a   :  { %v3346_v62 = vpop.eup %3345 }
0x118b   :  { %v3348_v10 = vpop.eup %3347  ;;  %v2060_v28 = vmul.f32 %v3346_v62, %v3983_v26 }
0x118c   :  { %v3350_v29 = vpop.eup %3349  ;;  %v2180_v32 = vmul.f32 %v3348_v10, %v2176_v30 }
0x118d   :  { %v2181_v8 = vmul.f32 %v3350_v29, %v2177_v5 }
0x11ea   :  { %v2063_v4 = vpop.permute.xlu0 %2062 }
0x11eb   :  { %v2065_v24 = vmul.f32 %v3346_v62, %v2063_v4  ;;  %v2185_v27 = vpop.permute.xlu1 %2184 }
0x11ec   :  { %v2190_v17 = vmul.f32 %v3348_v10, %v2185_v27 }
0x11ed   :  { %2067 = vrot.lane.b32.xlu1 %v2065_v24, %s3518_s3 }
0x11ee   :  { %2194 = vrot.lane.b32.xlu0 %v2190_v17, %s3518_s3  ;;  %v2187_v23 = vpop.permute.xlu0 %2186 }
0x11ef   :  { %v2191_v25 = vmul.f32 %v3350_v29, %v2187_v23 }
0x11f1   :  { %2196 = vrot.lane.b32.xlu1 %v2191_v25, %s3518_s3 }
0x125f   :  { %v2068_v31 = vpop.permute.xlu1 %2067 }
0x1260   :  { %v4068_v33 = vadd.f32 %v2068_v31, %v2060_v28  ;;  %v2195_v3 = vpop.permute.xlu0 %2194 }
0x1261   :  { %v4071_v6 = vadd.f32 %v2195_v3, %v2180_v32 }
0x1262   :  { %3351 = vtanh.f32 %v4068_v33 }
0x1263   :  { %3353 = vtanh.f32 %v4071_v6  ;;  %v2197_v34 = vpop.permute.xlu1 %2196  ;;  %v2489_v27 = vrot.slane %v4071_v6, 7 }
0x1264   :  { %v4075_v38 = vadd.f32 %v2197_v34, %v2181_v8 }
0x1266   :  { %3355 = vtanh.f32 %v4075_v38  ;;  %v2490_v23 = vrot.slane %v4075_v38, 7 }
0x126f   :  { %v3352_v26 = vpop.eup %3351 }
0x1270   :  { %v3354_v15 = vpop.eup %3353  ;;  %2073 = vrot.lane.b32.xlu0 %v3352_v26, %s3517_s25 }
0x1271   :  { %2206 = vrot.lane.b32.xlu1 %v3354_v15, %s3517_s25 }
0x1273   :  { %v3356_v45 = vpop.eup %3355 }
0x1274   :  { %2208 = vrot.lane.b32.xlu0 %v3356_v45, %s3517_s25 }
0x12e2   :  { %v2074_v21 = vpop.permute.xlu0 %2073 }
0x12e3   :  { %v2076_v52 = vmul.f32 %v3346_v62, %v2074_v21  ;;  %v2207_v54 = vpop.permute.xlu1 %2206 }
0x12e4   :  { %v2212_v53 = vmul.f32 %v3348_v10, %v2207_v54 }
0x12e5   :  { %2078 = vrot.lane.b32.xlu1 %v2076_v52, %s3518_s3 }
0x12e6   :  { %v2209_v55 = vpop.permute.xlu0 %2208  ;;  %v2288_v59 = vrot.slane %v2212_v53, 6 }
0x12e7   :  { %v2213_v56 = vmul.f32 %v3350_v29, %v2209_v55 }
0x12e9   :  { %v2289_v41 = vrot.slane %v2213_v56, 5 }
0x12eb   :  { %v2290_v44 = vsel %vm407_vm2, %v2289_v41, %v2288_v59 }
0x12ec   :  { %2291 = vrot.lane.b32.xlu0 %v2290_v44, %s3518_s3 }
0x1357   :  { %v2079_v1 = vpop.permute.xlu1 %2078 }
0x1358   :  { %2758 = vst.msk [vmem:[%s4159_s7 + $0xa] sm:$0x3] %vm518_vm4, %v2079_v1  ;;  %3140 = vmatmul.mubr.msk.f32.vlgmr.msra.gmra.mxu1 %vm206_vm3, %v2079_v1 }
0x1359   :  { %3154 = vmatpush3.msra.mxu1 %v3932_v35  ;;  %3161 = vmatprep.mubr.msk.f32.mxu1 %vm3516_vm0, %v3515_v0 }
0x135a   :  { %3155 = vmatprep.subr.mxu1 %v3515_v0 }
0x135b   :  { %3156 = vmatpush3.msra.mxu1 %v3938_v36 }
0x135c   :  { %3157 = vmatprep.subr.mxu1 %v3515_v0 }
0x135d   :  { %3158 = vmatpush3.msra.mxu1 %v3942_v37 }
0x135e   :  { %3159 = vmatprep.subr.mxu1 %v3515_v0  ;;  %v2292_v61 = vpop.permute.xlu0 %2291 }
0x135f   :  { %3160 = vmatpush3.msra.mxu1 %v3946_v39  ;;  %3151 = vmatmul.mubr.msk.f32.vlgmr.msra.gmra.mxu0 %vm206_vm3, %v2292_v61 }
0x1360   :  { %3162 = vmatmul.mubr.msk.f32.vlgmr.msra.gmra.mxu1 %vm206_vm3, %v2292_v61  ;;  %3175 = vmatprep.subr.mxu1 %v3515_v0 }
0x1361   :  { %3165 = vmatpush3.msra.mxu0 %v4015_v46  ;;  %3176 = vmatpush3.msra.mxu1 %v4025_v48 }
0x1362   :  { %3166 = vmatprep.subr.mxu0 %v3515_v0  ;;  %3177 = vmatprep.subr.mxu1 %v3515_v0 }
0x1363   :  { %3167 = vmatpush3.msra.mxu0 %v4022_v47  ;;  %3178 = vmatpush3.msra.mxu1 %v4033_v40 }
0x1364   :  { %3168 = vmatprep.subr.mxu0 %v3515_v0  ;;  %3179 = vmatprep.subr.mxu1 %v3515_v0 }
0x1365   :  { %3169 = vmatpush3.msra.mxu0 %v4030_v49  ;;  %3180 = vmatpush3.msra.mxu1 %v4041_v42 }
0x1366   :  { %3170 = vmatprep.subr.mxu0 %v3515_v0  ;;  %3181 = vmatprep.subr.mxu1 %v3515_v0 }
0x1367   :  { %3183 = vmatprep.mubr.msk.f32.mxu1 %vm3516_vm0, %v3515_v0  ;;  %3182 = vmatpush3.msra.mxu1 %v4046_v51 }
0x1368   :  { %3171 = vmatpush3.msra.mxu0 %v4038_v50  ;;  %3172 = vmatprep.mubr.msk.f32.mxu0 %vm3516_vm0, %v3515_v0 }
0x1418   :  { %v2282_v35 = vpop.f32.mrf.mxu1 }
0x141a   :  { %v3141_v36 = vpop.f32.mrf.mxu1 }
0x141f   :  { %v2361_v37 = vpop.f32.mrf.mxu0 }
0x1420   :  { %v2462_v39 = vpop.f32.mrf.mxu1  ;;  %v2362_v46 = vadd.f32 %v2361_v37, %v2282_v35 }
0x1421   :  { %v2467_v47 = vrot.slane %v2462_v39, 1  ;;  %v2468_v48 = vrot.slane %v2462_v39, 2  ;;  %v3152_v49 = vpop.f32.mrf.mxu0 }
0x1422   :  { %v3163_v40 = vpop.f32.mrf.mxu1  ;;  %v2365_v63 = vadd.f32 %v4055_v60, %v2362_v46 }
0x1423   :  { %v2471_v42 = vadd.f32 %v2467_v47, %v3621_v22  ;;  %v2472_v51 = vadd.f32 %v2468_v48, %v3619_v20 }
0x1424   :  { %v2764_v9 = vmul.f32 -1.442695, %v2365_v63 }
0x1425   :  { %3357 = vtanh.f32 %v2471_v42  ;;  %v2767_v7 = vmul.f32 -1.442695, %v2471_v42  ;;  %v2768_v22 = vmul.f32 -1.442695, %v2472_v51 }
0x1426   :  { %3359 = vtanh.f32 %v2365_v63 }
0x1427   :  { %3361 = vtanh.f32 %v2472_v51 }
0x1428   :  { %3363 = vpow2.f32 %v2767_v7 }
0x1429   :  { %3365 = vpow2.f32 %v2764_v9 }
0x142a   :  { %3367 = vpow2.f32 %v2768_v22 }
0x1432   :  { %v3358_v50 = vpop.eup %3357 }
0x1433   :  { %2497 = vrot.lane.b32.xlu1 %v3358_v50, %s3517_s25  ;;  %v3360_v0 = vpop.eup %3359 }
0x1434   :  { %v3362_v2 = vpop.eup %3361 }
0x1435   :  { %2499 = vrot.lane.b32.xlu0 %v3362_v2, %s3517_s25  ;;  %v3364_v43 = vpop.eup %3363 }
0x1436   :  { %v3366_v20 = vpop.eup %3365  ;;  %v2479_v57 = vadd.f32 1.0, %v3364_v43 }
0x1437   :  { %2375 = vrot.lane.b32.xlu1 %v3360_v0, %s3517_s25  ;;  %v3368_v11 = vpop.eup %3367  ;;  %v2369_v58 = vadd.f32 1.0, %v3366_v20 }
0x1438   :  { %v2480_v12 = vadd.f32 1.0, %v3368_v11  ;;  %3369 = vrcp.f32 %v2479_v57 }
0x1439   :  { %3371 = vrcp.f32 %v2369_v58 }
0x143a   :  { %3373 = vrcp.f32 %v2480_v12 }
0x1445   :  { %v3370_v13 = vpop.eup %3369 }
0x1446   :  { %v3372_v18 = vpop.eup %3371  ;;  %v2493_v17 = vmul.f32 %v3370_v13, %v2489_v27 }
0x1447   :  { %v3374_v19 = vpop.eup %3373  ;;  %v2373_v28 = vmul.f32 %v3372_v18, %v4068_v33 }
0x1448   :  { %v2494_v30 = vmul.f32 %v3374_v19, %v2490_v23 }
0x14a5   :  { %v2498_v14 = vpop.permute.xlu1 %2497 }
0x14a6   :  { %v2503_v16 = vmul.f32 %v3370_v13, %v2498_v14 }
0x14a7   :  { %v2500_v62 = vpop.permute.xlu0 %2499 }
0x14a8   :  { %2507 = vrot.lane.b32.xlu0 %v2503_v16, %s3518_s3  ;;  %v2504_v10 = vmul.f32 %v3374_v19, %v2500_v62 }
0x14a9   :  { %v2376_v4 = vpop.permute.xlu1 %2375 }
0x14aa   :  { %v2378_v24 = vmul.f32 %v3372_v18, %v2376_v4  ;;  %2509 = vrot.lane.b32.xlu1 %v2504_v10, %s3518_s3 }
0x14ac   :  { %2380 = vrot.lane.b32.xlu0 %v2378_v24, %s3518_s3 }
0x151a   :  { %v2508_v29 = vpop.permute.xlu0 %2507 }
0x151b   :  { %v2513_v25 = vadd.f32 %v2508_v29, %v2493_v17 }
0x151c   :  { %v2510_v31 = vpop.permute.xlu1 %2509 }
0x151d   :  { %3375 = vtanh.f32 %v2513_v25  ;;  %v2514_v3 = vadd.f32 %v2510_v31, %v2494_v30 }
0x151e   :  { %v2381_v32 = vpop.permute.xlu0 %2380 }
0x151f   :  { %v2383_v5 = vadd.f32 %v2381_v32, %v2373_v28  ;;  %3377 = vtanh.f32 %v2514_v3 }
0x1521   :  { %3379 = vtanh.f32 %v2383_v5 }
0x152a   :  { %v3376_v8 = vpop.eup %3375 }
0x152b   :  { %2519 = vrot.lane.b32.xlu1 %v3376_v8, %s3517_s25 }
0x152c   :  { %v3378_v34 = vpop.eup %3377 }
0x152d   :  { %2521 = vrot.lane.b32.xlu0 %v3378_v34, %s3517_s25 }
0x152e   :  { %v3380_v6 = vpop.eup %3379 }
0x152f   :  { %2386 = vrot.lane.b32.xlu1 %v3380_v6, %s3517_s25 }
0x159d   :  { %v2520_v38 = vpop.permute.xlu1 %2519 }
0x159e   :  { %v2525_v26 = vmul.f32 %v3370_v13, %v2520_v38 }
0x159f   :  { %v2522_v15 = vpop.permute.xlu0 %2521 }
0x15a0   :  { %v2601_v45 = vrot.slane %v2525_v26, 7  ;;  %v2526_v33 = vmul.f32 %v3374_v19, %v2522_v15 }
0x15a1   :  { %v2387_v21 = vpop.permute.xlu1 %2386 }
0x15a2   :  { %v2389_v52 = vmul.f32 %v3372_v18, %v2387_v21  ;;  %v2602_v54 = vrot.slane %v2526_v33, 6 }
0x15a4   :  { %2391 = vrot.lane.b32.xlu0 %v2389_v52, %s3518_s3  ;;  %v2603_v53 = vsel %vm407_vm2, %v2602_v54, %v2601_v45 }
0x15a5   :  { %2604 = vrot.lane.b32.xlu1 %v2603_v53, %s3518_s3 }
0x1616   :  { %v2392_v55 = vpop.permute.xlu0 %2391 }
0x1617   :  { %2765 = vst.msk [vmem:[%s4159_s7 + $0xc] sm:$0x3] %vm518_vm4, %v2392_v55  ;;  %3173 = vmatmul.mubr.msk.f32.vlgmr.msra.gmra.mxu0 %vm206_vm3, %v2392_v55  ;;  %v2605_v56 = vpop.permute.xlu1 %2604 }
0x1618   :  { %3184 = vmatmul.mubr.msk.f32.vlgmr.msra.gmra.mxu1 %vm206_vm3, %v2605_v56 }
0x16d7   :  { %v2595_v59 = vpop.f32.mrf.mxu0 }
0x16d8   :  { %v2674_v41 = vpop.f32.mrf.mxu1 }
0x16d9   :  { %v3174_v44 = vpop.f32.mrf.mxu0  ;;  %v2675_v1 = vadd.f32 %v2674_v41, %v2595_v59 }
0x16da   :  { %v3185_v61 = vpop.f32.mrf.mxu1 }
0x16db   :  { %v2678_v35 = vadd.f32 %v4055_v60, %v2675_v1 }
0x16dd   :  { %3381 = vtanh.f32 %v2678_v35  ;;  %v2771_v37 = vmul.f32 -1.442695, %v2678_v35 }
0x16df   :  { %3383 = vpow2.f32 %v2771_v37 }
0x16ea   :  { %v3382_v36 = vpop.eup %3381 }
0x16eb   :  { %2688 = vrot.lane.b32.xlu0 %v3382_v36, %s3517_s25 }
0x16ec   :  { %v3384_v39 = vpop.eup %3383 }
0x16ed   :  { %v2682_v46 = vadd.f32 1.0, %v3384_v39 }
0x16ef   :  { %3385 = vrcp.f32 %v2682_v46 }
0x16fc   :  { %v3386_v47 = vpop.eup %3385 }
0x16fd   :  { %v2686_v40 = vmul.f32 %v3386_v47, %v2383_v5 }
0x175d   :  { %v2689_v48 = vpop.permute.xlu0 %2688 }
0x175e   :  { %v2691_v49 = vmul.f32 %v3386_v47, %v2689_v48 }
0x1760   :  { %2693 = vrot.lane.b32.xlu1 %v2691_v49, %s3518_s3 }
0x17d2   :  { %v2694_v42 = vpop.permute.xlu1 %2693 }
0x17d3   :  { %v2696_v63 = vadd.f32 %v2694_v42, %v2686_v40 }
0x17d5   :  { %3387 = vtanh.f32 %v2696_v63 }
0x17e2   :  { %v3388_v51 = vpop.eup %3387 }
0x17e3   :  { %2699 = vrot.lane.b32.xlu0 %v3388_v51, %s3517_s25 }
0x1855   :  { %v2700_v60 = vpop.permute.xlu0 %2699 }
0x1856   :  { %v2702_v50 = vmul.f32 %v3386_v47, %v2700_v60 }
0x1858   :  { %2704 = vrot.lane.b32.xlu1 %v2702_v50, %s3518_s3 }
0x18ca   :  { %v2705_v0 = vpop.permute.xlu1 %2704 }
0x18cb   :  { %2772 = vst.msk [vmem:[%s4159_s7 + $0xe] sm:$0x3] %vm518_vm4, %v2705_v0 }
0x18cc   :  { %2713 = vsyncpa [#allocation3], 1 }
0x18cd   :  { %2714 = vsyncpa [#allocation5], 1 }
0x18ce   :  { %2715 = vsyncpa [#allocation8], 1 }

</bundles_post_ra>
